<compile_context>
chip_gen: v6e
topology: v6e:2x2x1
jax: 0.10.0
libtpu: 0.0.40
codegen_flags: <defaults>
</compile_context>

<pallas_src>
import math
import functools

import jax
import jax.numpy as jnp
from jax import lax
from jax.experimental import pallas as pl
from jax.experimental.pallas import tpu as pltpu


def _layernorm(h, g, b, eps=1e-5):
    mu = jnp.mean(h, axis=-1, keepdims=True)
    var = jnp.mean((h - mu) ** 2, axis=-1, keepdims=True)
    return (h - mu) * lax.rsqrt(var + eps) * g + b


def _gelu_exact(x):
    # nn.GELU() default = exact erf formulation
    return 0.5 * x * (1.0 + lax.erf(x / math.sqrt(2.0)))


def block_kernel(x_ref,
                 ln1g_ref, ln1b_ref,
                 wq_ref, wk_ref, wv_ref,
                 bq_ref, bk_ref, bv_ref,
                 wproj_ref, bproj_ref,
                 ln2g_ref, ln2b_ref,
                 w1_ref, b1_ref,
                 w2_ref, b2_ref,
                 out_ref,
                 *, num_heads, head_dim, q_tile):
    H, hd = num_heads, head_dim
    qi = pl.program_id(1)
    q_start = pl.multiple_of(qi * q_tile, q_tile)

    x_full = x_ref[0]                              # (S, D) f32 — K/V source
    S, D = x_full.shape
    x_q = x_ref[0, pl.ds(q_start, q_tile), :]      # (TQ, D) query rows of this tile

    # ---------------- attention branch ----------------
    # LayerNorm in f32 (row-wise, so LN on the query tile == slice of full LN).
    h_full = _layernorm(x_full, ln1g_ref[...], ln1b_ref[...]).astype(jnp.bfloat16)
    h_q = _layernorm(x_q, ln1g_ref[...], ln1b_ref[...]).astype(jnp.bfloat16)

    # bf16 operands, f32 accumulation.  wq/bq already carry the 1/sqrt(hd) scale.
    q = jnp.dot(h_q, wq_ref[...], preferred_element_type=jnp.float32) + bq_ref[...]      # (TQ, D)
    k = jnp.dot(h_full, wk_ref[...], preferred_element_type=jnp.float32) + bk_ref[...]   # (S, D)
    v = jnp.dot(h_full, wv_ref[...], preferred_element_type=jnp.float32) + bv_ref[...]   # (S, D)

    # Head-batched layout (H, seq, hd); relayout done in f32, cast afterwards.
    qh = q.reshape(q_tile, H, hd).transpose(1, 0, 2).astype(jnp.bfloat16)   # (H, TQ, hd)
    kh = k.reshape(S, H, hd).transpose(1, 0, 2).astype(jnp.bfloat16)        # (H, S, hd)
    vh = v.reshape(S, H, hd).transpose(1, 0, 2).astype(jnp.bfloat16)        # (H, S, hd)

    # Scores: one batched dot_general (batch = H), contracts hd — no k.T copy.
    s = jnp.einsum("hqd,hkd->hqk", qh, kh,
                   preferred_element_type=jnp.float32)                      # (H, TQ, S)
    s = s - jnp.max(s, axis=-1, keepdims=True)
    p = jnp.exp(s)
    p = p * pl.reciprocal(jnp.sum(p, axis=-1, keepdims=True), approx=True)  # EUP recip

    o = jnp.einsum("hqk,hkd->hqd", p.astype(jnp.bfloat16), vh,
                   preferred_element_type=jnp.float32)                      # (H, TQ, hd)

    # Merge heads back onto the embedding dim once, then one (TQ,D)@(D,D) proj.
    attn = o.transpose(1, 0, 2).reshape(q_tile, D)
    attn = jnp.dot(attn.astype(jnp.bfloat16), wproj_ref[...],
                   preferred_element_type=jnp.float32) + bproj_ref[...]
    # proj_drop / block dropout: identity at inference
    x1 = x_q + attn

    # ---------------- MLP branch ----------------
    h2 = _layernorm(x1, ln2g_ref[...], ln2b_ref[...]).astype(jnp.bfloat16)
    m = jnp.dot(h2, w1_ref[...], preferred_element_type=jnp.float32) + b1_ref[...]
    m = _gelu_exact(m)                                                      # exact erf, f32
    m = jnp.dot(m.astype(jnp.bfloat16), w2_ref[...],
                preferred_element_type=jnp.float32) + b2_ref[...]
    # mlp dropout: identity at inference
    out_ref[0] = (x1 + m).astype(out_ref.dtype)


def _split_qkv_params(wqkv, bqkv, num_heads, head_dim):
    """Split the PyTorch-convention interleaved [q_h|k_h|v_h] qkv weight into
    contiguous per-head-ordered wq/wk/wv (done once, host side)."""
    D = wqkv.shape[0]
    w = wqkv.reshape(D, num_heads, 3, head_dim)
    b = bqkv.reshape(1, num_heads, 3, head_dim)
    wq = w[:, :, 0, :].reshape(D, D)
    wk = w[:, :, 1, :].reshape(D, D)
    wv = w[:, :, 2, :].reshape(D, D)
    bq = b[:, :, 0, :].reshape(1, D)
    bk = b[:, :, 1, :].reshape(1, D)
    bv = b[:, :, 2, :].reshape(1, D)
    return wq, wk, wv, bq, bk, bv


def transformer_block(x, params, *, num_heads, q_tile_max=256):
    """params: dict of f32 JAX arrays, linear weights stored as (in, out)."""
    B, S, D = x.shape
    assert D % num_heads == 0
    hd = D // num_heads
    mlp_dim = params["w1"].shape[1]

    # ---- host-side parameter prep (once; free at kernel time) ----
    wq, wk, wv, bq, bk, bv = _split_qkv_params(params["wqkv"], params["bqkv"],
                                               num_heads, hd)
    scale = 1.0 / math.sqrt(hd)
    wq = wq * scale                       # fold the softmax scale into q proj
    bq = bq * scale
    bf = jnp.bfloat16
    f32 = jnp.float32
    ordered = [
        params["ln1_g"].astype(f32), params["ln1_b"].astype(f32),
        wq.astype(bf), wk.astype(bf), wv.astype(bf),
        bq.astype(f32), bk.astype(f32), bv.astype(f32),
        params["wproj"].astype(bf), params["bproj"].astype(f32),
        params["ln2_g"].astype(f32), params["ln2_b"].astype(f32),
        params["w1"].astype(bf), params["b1"].astype(f32),
        params["w2"].astype(bf), params["b2"].astype(f32),
    ]

    # Query tiling: more grid steps for pipelining / megacore balance at real
    # ViT sizes; single full-sequence tile when S is small or indivisible.
    TQ = S if (S <= q_tile_max or S % q_tile_max != 0) else q_tile_max
    NQ = S // TQ

    def full_spec(p):
        nd = p.ndim
        return pl.BlockSpec(p.shape, lambda b, qi, _nd=nd: (0,) * _nd)

    in_specs = [pl.BlockSpec((1, S, D), lambda b, qi: (b, 0, 0))]   # full seq per batch
    in_specs += [full_spec(p) for p in ordered]                     # resident weights
    out_spec = pl.BlockSpec((1, TQ, D), lambda b, qi: (b, qi, 0))   # lane-dense tile

    flops = (2 * B * S * D * (3 * D)            # q/k/v projections
             + 2 * B * S * D * D                # output projection
             + 4 * B * num_heads * S * S * hd   # scores + weighted sum
             + 4 * B * S * D * mlp_dim)         # MLP
    transcendentals = B * S * (num_heads * S + 4 * D)
    bytes_accessed = int(sum(int(p.size) * p.dtype.itemsize for p in ordered)
                         + 2 * B * S * D * x.dtype.itemsize)

    kern = functools.partial(block_kernel, num_heads=num_heads,
                             head_dim=hd, q_tile=TQ)

    return pl.pallas_call(
        kern,
        out_shape=jax.ShapeDtypeStruct((B, S, D), x.dtype),
        grid=(B, NQ),
        in_specs=in_specs,
        out_specs=out_spec,
        compiler_params=pltpu.CompilerParams(
            dimension_semantics=("parallel", "parallel"),
            # above the 16/32 MiB scoped defaults, below v7x's 64 MiB physical
            vmem_limit_bytes=48 * 1024 * 1024,
        ),
        cost_estimate=pl.CostEstimate(flops=int(flops),
                                      transcendentals=int(transcendentals),
                                      bytes_accessed=bytes_accessed),
    )(x, *ordered)


# ---------------- pure-JAX reference (for correctness check) ----------------
def reference_block(x, params, num_heads):
    B, S, D = x.shape
    hd = D // num_heads
    h = _layernorm(x, params["ln1_g"], params["ln1_b"])
    qkv = h @ params["wqkv"] + params["bqkv"]                     # (B, S, 3D)
    qkv = qkv.reshape(B, S, num_heads, 3 * hd).transpose(0, 2, 1, 3)
    q, k, v = jnp.split(qkv, 3, axis=-1)
    s = jnp.einsum("bhqd,bhkd->bhqk", q, k) / math.sqrt(hd)
    p = jax.nn.softmax(s, axis=-1)
    o = jnp.einsum("bhqk,bhkd->bhqd", p, v).transpose(0, 2, 1, 3).reshape(B, S, D)
    o = o @ params["wproj"] + params["bproj"]
    x1 = x + o
    h2 = _layernorm(x1, params["ln2_g"], params["ln2_b"])
    m = _gelu_exact(h2 @ params["w1"] + params["b1"])
    m = m @ params["w2"] + params["b2"]
    return x1 + m


if __name__ == "__main__":
    # Small but lane-dense shapes: D is a multiple of 128 so stores are full
    # vst (no masked partial stores); everything else stays tiny.
    B, S, D, H, MLP_DIM = 2, 16, 128, 4, 256

    key = jax.random.PRNGKey(0)
    ks = jax.random.split(key, 10)

    x = jax.random.normal(ks[0], (B, S, D), dtype=jnp.float32)

    # Deterministic synthetic parameters. Linear weights stored as (in, out)
    # (already transposed relative to PyTorch's (out, in) convention).
    params = {
        "ln1_g": jnp.ones((1, D), jnp.float32),
        "ln1_b": jnp.zeros((1, D), jnp.float32),
        "wqkv":  (jax.random.normal(ks[1], (D, 3 * D)) * 0.05).astype(jnp.float32),
        "bqkv":  (jax.random.normal(ks[2], (1, 3 * D)) * 0.02).astype(jnp.float32),
        "wproj": (jax.random.normal(ks[3], (D, D)) * 0.05).astype(jnp.float32),
        "bproj": (jax.random.normal(ks[4], (1, D)) * 0.02).astype(jnp.float32),
        "ln2_g": jnp.ones((1, D), jnp.float32),
        "ln2_b": jnp.zeros((1, D), jnp.float32),
        "w1":    (jax.random.normal(ks[5], (D, MLP_DIM)) * 0.05).astype(jnp.float32),
        "b1":    (jax.random.normal(ks[6], (1, MLP_DIM)) * 0.02).astype(jnp.float32),
        "w2":    (jax.random.normal(ks[7], (MLP_DIM, D)) * 0.05).astype(jnp.float32),
        "b2":    (jax.random.normal(ks[8], (1, D)) * 0.02).astype(jnp.float32),
    }

    y = transformer_block(x, params, num_heads=H)
    y = jax.block_until_ready(y)

    y_ref = reference_block(x, params, H)
    assert y.shape == (B, S, D)
    max_err = float(jnp.max(jnp.abs(y - y_ref)))
    # bf16 MXU operands + approx reciprocal -> loosened tolerance vs f32 ref.
    assert jnp.allclose(y, y_ref, atol=2e-2, rtol=2e-2), \
        f"mismatch vs JAX reference (max abs err {max_err})"

    # TODO(synk): dropout layers are inference-mode identities (no stochastic
    # masking); lrp=False path only (Block default).
    print("KERNEL_OK")
</pallas_src>

<mosaic_0001>
module attributes {stable_mosaic.version = 11 : i64} {
  func.func @block_kernel(%arg0: i32, %arg1: i32, %arg2: memref<1x16x128xf32, #tpu.memory_space<vmem>>, %arg3: memref<1x128xf32, #tpu.memory_space<vmem>>, %arg4: memref<1x128xf32, #tpu.memory_space<vmem>>, %arg5: memref<128x128xbf16, #tpu.memory_space<vmem>>, %arg6: memref<128x128xbf16, #tpu.memory_space<vmem>>, %arg7: memref<128x128xbf16, #tpu.memory_space<vmem>>, %arg8: memref<1x128xf32, #tpu.memory_space<vmem>>, %arg9: memref<1x128xf32, #tpu.memory_space<vmem>>, %arg10: memref<1x128xf32, #tpu.memory_space<vmem>>, %arg11: memref<128x128xbf16, #tpu.memory_space<vmem>>, %arg12: memref<1x128xf32, #tpu.memory_space<vmem>>, %arg13: memref<1x128xf32, #tpu.memory_space<vmem>>, %arg14: memref<1x128xf32, #tpu.memory_space<vmem>>, %arg15: memref<128x256xbf16, #tpu.memory_space<vmem>>, %arg16: memref<1x256xf32, #tpu.memory_space<vmem>>, %arg17: memref<256x128xbf16, #tpu.memory_space<vmem>>, %arg18: memref<1x128xf32, #tpu.memory_space<vmem>>, %arg19: memref<1x16x128xf32, #tpu.memory_space<vmem>>) attributes {dimension_semantics = [#tpu.dimension_semantics<parallel>, #tpu.dimension_semantics<parallel>], iteration_bounds = array<i64: 2, 1>, scalar_prefetch = 0 : i64, scratch_operands = 0 : i64, tpu.core_type = #tpu.core_type<tc>, window_params = [{transform_indices = @transform_0, window_bounds = array<i64: 1, 16, 128>}, {pipeline_mode = #tpu.pipeline_mode<synchronous>, transform_indices = @transform_1, window_bounds = array<i64: 1, 128>}, {pipeline_mode = #tpu.pipeline_mode<synchronous>, transform_indices = @transform_2, window_bounds = array<i64: 1, 128>}, {pipeline_mode = #tpu.pipeline_mode<synchronous>, transform_indices = @transform_3, window_bounds = array<i64: 128, 128>}, {pipeline_mode = #tpu.pipeline_mode<synchronous>, transform_indices = @transform_4, window_bounds = array<i64: 128, 128>}, {pipeline_mode = #tpu.pipeline_mode<synchronous>, transform_indices = @transform_5, window_bounds = array<i64: 128, 128>}, {pipeline_mode = #tpu.pipeline_mode<synchronous>, transform_indices = @transform_6, window_bounds = array<i64: 1, 128>}, {pipeline_mode = #tpu.pipeline_mode<synchronous>, transform_indices = @transform_7, window_bounds = array<i64: 1, 128>}, {pipeline_mode = #tpu.pipeline_mode<synchronous>, transform_indices = @transform_8, window_bounds = array<i64: 1, 128>}, {pipeline_mode = #tpu.pipeline_mode<synchronous>, transform_indices = @transform_9, window_bounds = array<i64: 128, 128>}, {pipeline_mode = #tpu.pipeline_mode<synchronous>, transform_indices = @transform_10, window_bounds = array<i64: 1, 128>}, {pipeline_mode = #tpu.pipeline_mode<synchronous>, transform_indices = @transform_11, window_bounds = array<i64: 1, 128>}, {pipeline_mode = #tpu.pipeline_mode<synchronous>, transform_indices = @transform_12, window_bounds = array<i64: 1, 128>}, {pipeline_mode = #tpu.pipeline_mode<synchronous>, transform_indices = @transform_13, window_bounds = array<i64: 128, 256>}, {pipeline_mode = #tpu.pipeline_mode<synchronous>, transform_indices = @transform_14, window_bounds = array<i64: 1, 256>}, {pipeline_mode = #tpu.pipeline_mode<synchronous>, transform_indices = @transform_15, window_bounds = array<i64: 256, 128>}, {pipeline_mode = #tpu.pipeline_mode<synchronous>, transform_indices = @transform_16, window_bounds = array<i64: 1, 128>}, {transform_indices = @transform_17, window_bounds = array<i64: 1, 16, 128>}]} {
    %c16_i32 = arith.constant 16 : i32
    %0 = arith.muli %arg1, %c16_i32 : i32
    %1 = tpu.assume_multiple %0, 16 : i32
    %c0 = arith.constant 0 : index
    %c0_0 = arith.constant 0 : index
    %c0_1 = arith.constant 0 : index
    %2 = vector.load %arg2[%c0, %c0_0, %c0_1] : memref<1x16x128xf32, #tpu.memory_space<vmem>>, vector<1x16x128xf32>
    %3 = vector.shape_cast %2 : vector<1x16x128xf32> to vector<16x128xf32>
    %c0_2 = arith.constant 0 : index
    %4 = arith.index_cast %1 : i32 to index
    %c0_3 = arith.constant 0 : index
    %5 = vector.load %arg2[%c0_2, %4, %c0_3] : memref<1x16x128xf32, #tpu.memory_space<vmem>>, vector<1x16x128xf32>
    %6 = vector.shape_cast %5 : vector<1x16x128xf32> to vector<16x128xf32>
    %c0_4 = arith.constant 0 : index
    %c0_5 = arith.constant 0 : index
    %7 = vector.load %arg3[%c0_4, %c0_5] : memref<1x128xf32, #tpu.memory_space<vmem>>, vector<1x128xf32>
    %c0_6 = arith.constant 0 : index
    %c0_7 = arith.constant 0 : index
    %8 = vector.load %arg4[%c0_6, %c0_7] : memref<1x128xf32, #tpu.memory_space<vmem>>, vector<1x128xf32>
    %cst = arith.constant dense<0.000000e+00> : vector<16xf32>
    %9 = vector.multi_reduction <add>, %3, %cst [1] : vector<16x128xf32> to vector<16xf32>
    %10 = vector.shape_cast %9 : vector<16xf32> to vector<16x1xf32>
    %cst_8 = arith.constant 1.280000e+02 : f32
    %11 = vector.broadcast %cst_8 : f32 to vector<16x1xf32>
    %12 = arith.divf %10, %11 : vector<16x1xf32>
    %13 = vector.broadcast %12 : vector<16x1xf32> to vector<16x128xf32>
    %14 = arith.subf %3, %13 : vector<16x128xf32>
    %15 = arith.mulf %14, %14 : vector<16x128xf32>
    %cst_9 = arith.constant dense<0.000000e+00> : vector<16xf32>
    %16 = vector.multi_reduction <add>, %15, %cst_9 [1] : vector<16x128xf32> to vector<16xf32>
    %17 = vector.shape_cast %16 : vector<16xf32> to vector<16x1xf32>
    %cst_10 = arith.constant 1.280000e+02 : f32
    %18 = vector.broadcast %cst_10 : f32 to vector<16x1xf32>
    %19 = arith.divf %17, %18 : vector<16x1xf32>
    %20 = vector.broadcast %12 : vector<16x1xf32> to vector<16x128xf32>
    %21 = arith.subf %3, %20 : vector<16x128xf32>
    %cst_11 = arith.constant 9.99999974E-6 : f32
    %22 = vector.broadcast %cst_11 : f32 to vector<16x1xf32>
    %23 = arith.addf %19, %22 : vector<16x1xf32>
    %24 = math.rsqrt %23 : vector<16x1xf32>
    %25 = vector.broadcast %24 : vector<16x1xf32> to vector<16x128xf32>
    %26 = arith.mulf %21, %25 : vector<16x128xf32>
    %27 = vector.broadcast %7 : vector<1x128xf32> to vector<16x128xf32>
    %28 = arith.mulf %26, %27 : vector<16x128xf32>
    %29 = vector.broadcast %8 : vector<1x128xf32> to vector<16x128xf32>
    %30 = arith.addf %28, %29 : vector<16x128xf32>
    %31 = arith.truncf %30 : vector<16x128xf32> to vector<16x128xbf16>
    %c0_12 = arith.constant 0 : index
    %c0_13 = arith.constant 0 : index
    %32 = vector.load %arg3[%c0_12, %c0_13] : memref<1x128xf32, #tpu.memory_space<vmem>>, vector<1x128xf32>
    %c0_14 = arith.constant 0 : index
    %c0_15 = arith.constant 0 : index
    %33 = vector.load %arg4[%c0_14, %c0_15] : memref<1x128xf32, #tpu.memory_space<vmem>>, vector<1x128xf32>
    %cst_16 = arith.constant dense<0.000000e+00> : vector<16xf32>
    %34 = vector.multi_reduction <add>, %6, %cst_16 [1] : vector<16x128xf32> to vector<16xf32>
    %35 = vector.shape_cast %34 : vector<16xf32> to vector<16x1xf32>
    %cst_17 = arith.constant 1.280000e+02 : f32
    %36 = vector.broadcast %cst_17 : f32 to vector<16x1xf32>
    %37 = arith.divf %35, %36 : vector<16x1xf32>
    %38 = vector.broadcast %37 : vector<16x1xf32> to vector<16x128xf32>
    %39 = arith.subf %6, %38 : vector<16x128xf32>
    %40 = arith.mulf %39, %39 : vector<16x128xf32>
    %cst_18 = arith.constant dense<0.000000e+00> : vector<16xf32>
    %41 = vector.multi_reduction <add>, %40, %cst_18 [1] : vector<16x128xf32> to vector<16xf32>
    %42 = vector.shape_cast %41 : vector<16xf32> to vector<16x1xf32>
    %cst_19 = arith.constant 1.280000e+02 : f32
    %43 = vector.broadcast %cst_19 : f32 to vector<16x1xf32>
    %44 = arith.divf %42, %43 : vector<16x1xf32>
    %45 = vector.broadcast %37 : vector<16x1xf32> to vector<16x128xf32>
    %46 = arith.subf %6, %45 : vector<16x128xf32>
    %cst_20 = arith.constant 9.99999974E-6 : f32
    %47 = vector.broadcast %cst_20 : f32 to vector<16x1xf32>
    %48 = arith.addf %44, %47 : vector<16x1xf32>
    %49 = math.rsqrt %48 : vector<16x1xf32>
    %50 = vector.broadcast %49 : vector<16x1xf32> to vector<16x128xf32>
    %51 = arith.mulf %46, %50 : vector<16x128xf32>
    %52 = vector.broadcast %32 : vector<1x128xf32> to vector<16x128xf32>
    %53 = arith.mulf %51, %52 : vector<16x128xf32>
    %54 = vector.broadcast %33 : vector<1x128xf32> to vector<16x128xf32>
    %55 = arith.addf %53, %54 : vector<16x128xf32>
    %56 = arith.truncf %55 : vector<16x128xf32> to vector<16x128xbf16>
    %c0_21 = arith.constant 0 : index
    %c0_22 = arith.constant 0 : index
    %57 = vector.load %arg5[%c0_21, %c0_22] : memref<128x128xbf16, #tpu.memory_space<vmem>>, vector<128x128xbf16>
    %cst_23 = arith.constant dense<0.000000e+00> : vector<16x128xf32>
    %58 = tpu.matmul %56, %57, %cst_23 {dimension_numbers = #tpu.dot_dimension_numbers<[1], [0], [0], [1], [0, 0, 1, 1], [], []>} : vector<16x128xbf16>, vector<128x128xbf16>, vector<16x128xf32> -> vector<16x128xf32>
    %c0_24 = arith.constant 0 : index
    %c0_25 = arith.constant 0 : index
    %59 = vector.load %arg8[%c0_24, %c0_25] : memref<1x128xf32, #tpu.memory_space<vmem>>, vector<1x128xf32>
    %60 = vector.broadcast %59 : vector<1x128xf32> to vector<16x128xf32>
    %61 = arith.addf %58, %60 : vector<16x128xf32>
    %c0_26 = arith.constant 0 : index
    %c0_27 = arith.constant 0 : index
    %62 = vector.load %arg6[%c0_26, %c0_27] : memref<128x128xbf16, #tpu.memory_space<vmem>>, vector<128x128xbf16>
    %cst_28 = arith.constant dense<0.000000e+00> : vector<16x128xf32>
    %63 = tpu.matmul %31, %62, %cst_28 {dimension_numbers = #tpu.dot_dimension_numbers<[1], [0], [0], [1], [0, 0, 1, 1], [], []>} : vector<16x128xbf16>, vector<128x128xbf16>, vector<16x128xf32> -> vector<16x128xf32>
    %c0_29 = arith.constant 0 : index
    %c0_30 = arith.constant 0 : index
    %64 = vector.load %arg9[%c0_29, %c0_30] : memref<1x128xf32, #tpu.memory_space<vmem>>, vector<1x128xf32>
    %65 = vector.broadcast %64 : vector<1x128xf32> to vector<16x128xf32>
    %66 = arith.addf %63, %65 : vector<16x128xf32>
    %c0_31 = arith.constant 0 : index
    %c0_32 = arith.constant 0 : index
    %67 = vector.load %arg7[%c0_31, %c0_32] : memref<128x128xbf16, #tpu.memory_space<vmem>>, vector<128x128xbf16>
    %cst_33 = arith.constant dense<0.000000e+00> : vector<16x128xf32>
    %68 = tpu.matmul %31, %67, %cst_33 {dimension_numbers = #tpu.dot_dimension_numbers<[1], [0], [0], [1], [0, 0, 1, 1], [], []>} : vector<16x128xbf16>, vector<128x128xbf16>, vector<16x128xf32> -> vector<16x128xf32>
    %c0_34 = arith.constant 0 : index
    %c0_35 = arith.constant 0 : index
    %69 = vector.load %arg10[%c0_34, %c0_35] : memref<1x128xf32, #tpu.memory_space<vmem>>, vector<1x128xf32>
    %70 = vector.broadcast %69 : vector<1x128xf32> to vector<16x128xf32>
    %71 = arith.addf %68, %70 : vector<16x128xf32>
    %72 = vector.shape_cast %61 : vector<16x128xf32> to vector<16x4x32xf32>
    %73 = tpu.transpose %72, [1, 0, 2] : vector<16x4x32xf32> -> vector<4x16x32xf32>
    %74 = arith.truncf %73 : vector<4x16x32xf32> to vector<4x16x32xbf16>
    %75 = vector.shape_cast %66 : vector<16x128xf32> to vector<16x4x32xf32>
    %76 = tpu.transpose %75, [1, 0, 2] : vector<16x4x32xf32> -> vector<4x16x32xf32>
    %77 = arith.truncf %76 : vector<4x16x32xf32> to vector<4x16x32xbf16>
    %78 = vector.shape_cast %71 : vector<16x128xf32> to vector<16x4x32xf32>
    %79 = tpu.transpose %78, [1, 0, 2] : vector<16x4x32xf32> -> vector<4x16x32xf32>
    %80 = arith.truncf %79 : vector<4x16x32xf32> to vector<4x16x32xbf16>
    "tpu.trace_start"() <{level = 10 : i32, message = "hqd,hkd->hqk"}> : () -> ()
    %cst_36 = arith.constant dense<0.000000e+00> : vector<4x16x16xf32>
    %81 = tpu.matmul %74, %77, %cst_36 {dimension_numbers = #tpu.dot_dimension_numbers<[2], [2], [1], [1], [0, 0, 0, 1, 1, 1], [0], [0]>} : vector<4x16x32xbf16>, vector<4x16x32xbf16>, vector<4x16x16xf32> -> vector<4x16x16xf32>
    "tpu.trace_stop"() : () -> ()
    %cst_37 = arith.constant dense<0xFF800000> : vector<4x16xf32>
    %82 = vector.multi_reduction <maximumf>, %81, %cst_37 [2] : vector<4x16x16xf32> to vector<4x16xf32>
    %83 = vector.shape_cast %82 : vector<4x16xf32> to vector<4x16x1xf32>
    %84 = vector.broadcast %83 : vector<4x16x1xf32> to vector<4x16x16xf32>
    %85 = arith.subf %81, %84 : vector<4x16x16xf32>
    %86 = math.exp %85 : vector<4x16x16xf32>
    %cst_38 = arith.constant dense<0.000000e+00> : vector<4x16xf32>
    %87 = vector.multi_reduction <add>, %86, %cst_38 [2] : vector<4x16x16xf32> to vector<4x16xf32>
    %88 = vector.shape_cast %87 : vector<4x16xf32> to vector<4x16x1xf32>
    %89 = tpu.reciprocal %88 {approx = true} : vector<4x16x1xf32> -> vector<4x16x1xf32>
    %90 = vector.broadcast %89 : vector<4x16x1xf32> to vector<4x16x16xf32>
    %91 = arith.mulf %86, %90 : vector<4x16x16xf32>
    %92 = arith.truncf %91 : vector<4x16x16xf32> to vector<4x16x16xbf16>
    "tpu.trace_start"() <{level = 10 : i32, message = "hqk,hkd->hqd"}> : () -> ()
    %cst_39 = arith.constant dense<0.000000e+00> : vector<4x16x32xf32>
    %93 = tpu.matmul %92, %80, %cst_39 {dimension_numbers = #tpu.dot_dimension_numbers<[2], [1], [1], [2], [0, 0, 0, 1, 1, 2], [0], [0]>} : vector<4x16x16xbf16>, vector<4x16x32xbf16>, vector<4x16x32xf32> -> vector<4x16x32xf32>
    "tpu.trace_stop"() : () -> ()
    %94 = tpu.transpose %93, [1, 0, 2] : vector<4x16x32xf32> -> vector<16x4x32xf32>
    %95 = vector.shape_cast %94 : vector<16x4x32xf32> to vector<16x128xf32>
    %96 = arith.truncf %95 : vector<16x128xf32> to vector<16x128xbf16>
    %c0_40 = arith.constant 0 : index
    %c0_41 = arith.constant 0 : index
    %97 = vector.load %arg11[%c0_40, %c0_41] : memref<128x128xbf16, #tpu.memory_space<vmem>>, vector<128x128xbf16>
    %cst_42 = arith.constant dense<0.000000e+00> : vector<16x128xf32>
    %98 = tpu.matmul %96, %97, %cst_42 {dimension_numbers = #tpu.dot_dimension_numbers<[1], [0], [0], [1], [0, 0, 1, 1], [], []>} : vector<16x128xbf16>, vector<128x128xbf16>, vector<16x128xf32> -> vector<16x128xf32>
    %c0_43 = arith.constant 0 : index
    %c0_44 = arith.constant 0 : index
    %99 = vector.load %arg12[%c0_43, %c0_44] : memref<1x128xf32, #tpu.memory_space<vmem>>, vector<1x128xf32>
    %100 = vector.broadcast %99 : vector<1x128xf32> to vector<16x128xf32>
    %101 = arith.addf %98, %100 : vector<16x128xf32>
    %102 = arith.addf %6, %101 : vector<16x128xf32>
    %c0_45 = arith.constant 0 : index
    %c0_46 = arith.constant 0 : index
    %103 = vector.load %arg13[%c0_45, %c0_46] : memref<1x128xf32, #tpu.memory_space<vmem>>, vector<1x128xf32>
    %c0_47 = arith.constant 0 : index
    %c0_48 = arith.constant 0 : index
    %104 = vector.load %arg14[%c0_47, %c0_48] : memref<1x128xf32, #tpu.memory_space<vmem>>, vector<1x128xf32>
    %cst_49 = arith.constant dense<0.000000e+00> : vector<16xf32>
    %105 = vector.multi_reduction <add>, %102, %cst_49 [1] : vector<16x128xf32> to vector<16xf32>
    %106 = vector.shape_cast %105 : vector<16xf32> to vector<16x1xf32>
    %cst_50 = arith.constant 1.280000e+02 : f32
    %107 = vector.broadcast %cst_50 : f32 to vector<16x1xf32>
    %108 = arith.divf %106, %107 : vector<16x1xf32>
    %109 = vector.broadcast %108 : vector<16x1xf32> to vector<16x128xf32>
    %110 = arith.subf %102, %109 : vector<16x128xf32>
    %111 = arith.mulf %110, %110 : vector<16x128xf32>
    %cst_51 = arith.constant dense<0.000000e+00> : vector<16xf32>
    %112 = vector.multi_reduction <add>, %111, %cst_51 [1] : vector<16x128xf32> to vector<16xf32>
    %113 = vector.shape_cast %112 : vector<16xf32> to vector<16x1xf32>
    %cst_52 = arith.constant 1.280000e+02 : f32
    %114 = vector.broadcast %cst_52 : f32 to vector<16x1xf32>
    %115 = arith.divf %113, %114 : vector<16x1xf32>
    %116 = vector.broadcast %108 : vector<16x1xf32> to vector<16x128xf32>
    %117 = arith.subf %102, %116 : vector<16x128xf32>
    %cst_53 = arith.constant 9.99999974E-6 : f32
    %118 = vector.broadcast %cst_53 : f32 to vector<16x1xf32>
    %119 = arith.addf %115, %118 : vector<16x1xf32>
    %120 = math.rsqrt %119 : vector<16x1xf32>
    %121 = vector.broadcast %120 : vector<16x1xf32> to vector<16x128xf32>
    %122 = arith.mulf %117, %121 : vector<16x128xf32>
    %123 = vector.broadcast %103 : vector<1x128xf32> to vector<16x128xf32>
    %124 = arith.mulf %122, %123 : vector<16x128xf32>
    %125 = vector.broadcast %104 : vector<1x128xf32> to vector<16x128xf32>
    %126 = arith.addf %124, %125 : vector<16x128xf32>
    %127 = arith.truncf %126 : vector<16x128xf32> to vector<16x128xbf16>
    %c0_54 = arith.constant 0 : index
    %c0_55 = arith.constant 0 : index
    %128 = vector.load %arg15[%c0_54, %c0_55] : memref<128x256xbf16, #tpu.memory_space<vmem>>, vector<128x256xbf16>
    %cst_56 = arith.constant dense<0.000000e+00> : vector<16x256xf32>
    %129 = tpu.matmul %127, %128, %cst_56 {dimension_numbers = #tpu.dot_dimension_numbers<[1], [0], [0], [1], [0, 0, 1, 1], [], []>} : vector<16x128xbf16>, vector<128x256xbf16>, vector<16x256xf32> -> vector<16x256xf32>
    %c0_57 = arith.constant 0 : index
    %c0_58 = arith.constant 0 : index
    %130 = vector.load %arg16[%c0_57, %c0_58] : memref<1x256xf32, #tpu.memory_space<vmem>>, vector<1x256xf32>
    %131 = vector.broadcast %130 : vector<1x256xf32> to vector<16x256xf32>
    %132 = arith.addf %129, %131 : vector<16x256xf32>
    %cst_59 = arith.constant 5.000000e-01 : f32
    %133 = vector.broadcast %cst_59 : f32 to vector<16x256xf32>
    %134 = arith.mulf %133, %132 : vector<16x256xf32>
    %cst_60 = arith.constant 1.41421354 : f32
    %135 = vector.broadcast %cst_60 : f32 to vector<16x256xf32>
    %136 = arith.divf %132, %135 : vector<16x256xf32>
    %137 = math.erf %136 : vector<16x256xf32>
    %cst_61 = arith.constant 1.000000e+00 : f32
    %138 = vector.broadcast %cst_61 : f32 to vector<16x256xf32>
    %139 = arith.addf %138, %137 : vector<16x256xf32>
    %140 = arith.mulf %134, %139 : vector<16x256xf32>
    %141 = arith.truncf %140 : vector<16x256xf32> to vector<16x256xbf16>
    %c0_62 = arith.constant 0 : index
    %c0_63 = arith.constant 0 : index
    %142 = vector.load %arg17[%c0_62, %c0_63] : memref<256x128xbf16, #tpu.memory_space<vmem>>, vector<256x128xbf16>
    %cst_64 = arith.constant dense<0.000000e+00> : vector<16x128xf32>
    %143 = tpu.matmul %141, %142, %cst_64 {dimension_numbers = #tpu.dot_dimension_numbers<[1], [0], [0], [1], [0, 0, 1, 1], [], []>} : vector<16x256xbf16>, vector<256x128xbf16>, vector<16x128xf32> -> vector<16x128xf32>
    %c0_65 = arith.constant 0 : index
    %c0_66 = arith.constant 0 : index
    %144 = vector.load %arg18[%c0_65, %c0_66] : memref<1x128xf32, #tpu.memory_space<vmem>>, vector<1x128xf32>
    %145 = vector.broadcast %144 : vector<1x128xf32> to vector<16x128xf32>
    %146 = arith.addf %143, %145 : vector<16x128xf32>
    %147 = arith.addf %102, %146 : vector<16x128xf32>
    %c0_67 = arith.constant 0 : index
    %c0_68 = arith.constant 0 : index
    %c0_69 = arith.constant 0 : index
    %148 = vector.load %arg19[%c0_67, %c0_68, %c0_69] : memref<1x16x128xf32, #tpu.memory_space<vmem>>, vector<1x16x128xf32>
    %149 = vector.shape_cast %148 : vector<1x16x128xf32> to vector<16x128xf32>
    %150 = vector.shape_cast %147 : vector<16x128xf32> to vector<1x16x128xf32>
    tpu.vector_store %arg19[%c0_67, %c0_68, %c0_69], %150 {strides = array<i32>} : memref<1x16x128xf32, #tpu.memory_space<vmem>>, vector<1x16x128xf32>,
    return
  }
  func.func @transform_0(%arg0: i32, %arg1: i32) -> (i32, i32, i32) {
    %c0_i32 = arith.constant 0 : i32
    %c0_i32_0 = arith.constant 0 : i32
    %c0_i32_1 = arith.constant 0 : i32
    return %arg0, %c0_i32, %c0_i32_0 : i32, i32, i32
  }
  func.func @transform_1(%arg0: i32, %arg1: i32) -> (i32, i32) {
    %c0_i32 = arith.constant 0 : i32
    %c0_i32_0 = arith.constant 0 : i32
    %c0_i32_1 = arith.constant 0 : i32
    return %c0_i32, %c0_i32_0 : i32, i32
  }
  func.func @transform_2(%arg0: i32, %arg1: i32) -> (i32, i32) {
    %c0_i32 = arith.constant 0 : i32
    %c0_i32_0 = arith.constant 0 : i32
    %c0_i32_1 = arith.constant 0 : i32
    return %c0_i32, %c0_i32_0 : i32, i32
  }
  func.func @transform_3(%arg0: i32, %arg1: i32) -> (i32, i32) {
    %c0_i32 = arith.constant 0 : i32
    %c0_i32_0 = arith.constant 0 : i32
    %c0_i32_1 = arith.constant 0 : i32
    return %c0_i32, %c0_i32_0 : i32, i32
  }
  func.func @transform_4(%arg0: i32, %arg1: i32) -> (i32, i32) {
    %c0_i32 = arith.constant 0 : i32
    %c0_i32_0 = arith.constant 0 : i32
    %c0_i32_1 = arith.constant 0 : i32
    return %c0_i32, %c0_i32_0 : i32, i32
  }
  func.func @transform_5(%arg0: i32, %arg1: i32) -> (i32, i32) {
    %c0_i32 = arith.constant 0 : i32
    %c0_i32_0 = arith.constant 0 : i32
    %c0_i32_1 = arith.constant 0 : i32
    return %c0_i32, %c0_i32_0 : i32, i32
  }
  func.func @transform_6(%arg0: i32, %arg1: i32) -> (i32, i32) {
    %c0_i32 = arith.constant 0 : i32
    %c0_i32_0 = arith.constant 0 : i32
    %c0_i32_1 = arith.constant 0 : i32
    return %c0_i32, %c0_i32_0 : i32, i32
  }
  func.func @transform_7(%arg0: i32, %arg1: i32) -> (i32, i32) {
    %c0_i32 = arith.constant 0 : i32
    %c0_i32_0 = arith.constant 0 : i32
    %c0_i32_1 = arith.constant 0 : i32
    return %c0_i32, %c0_i32_0 : i32, i32
  }
  func.func @transform_8(%arg0: i32, %arg1: i32) -> (i32, i32) {
    %c0_i32 = arith.constant 0 : i32
    %c0_i32_0 = arith.constant 0 : i32
    %c0_i32_1 = arith.constant 0 : i32
    return %c0_i32, %c0_i32_0 : i32, i32
  }
  func.func @transform_9(%arg0: i32, %arg1: i32) -> (i32, i32) {
    %c0_i32 = arith.constant 0 : i32
    %c0_i32_0 = arith.constant 0 : i32
    %c0_i32_1 = arith.constant 0 : i32
    return %c0_i32, %c0_i32_0 : i32, i32
  }
  func.func @transform_10(%arg0: i32, %arg1: i32) -> (i32, i32) {
    %c0_i32 = arith.constant 0 : i32
    %c0_i32_0 = arith.constant 0 : i32
    %c0_i32_1 = arith.constant 0 : i32
    return %c0_i32, %c0_i32_0 : i32, i32
  }
  func.func @transform_11(%arg0: i32, %arg1: i32) -> (i32, i32) {
    %c0_i32 = arith.constant 0 : i32
    %c0_i32_0 = arith.constant 0 : i32
    %c0_i32_1 = arith.constant 0 : i32
    return %c0_i32, %c0_i32_0 : i32, i32
  }
  func.func @transform_12(%arg0: i32, %arg1: i32) -> (i32, i32) {
    %c0_i32 = arith.constant 0 : i32
    %c0_i32_0 = arith.constant 0 : i32
    %c0_i32_1 = arith.constant 0 : i32
    return %c0_i32, %c0_i32_0 : i32, i32
  }
  func.func @transform_13(%arg0: i32, %arg1: i32) -> (i32, i32) {
    %c0_i32 = arith.constant 0 : i32
    %c0_i32_0 = arith.constant 0 : i32
    %c0_i32_1 = arith.constant 0 : i32
    return %c0_i32, %c0_i32_0 : i32, i32
  }
  func.func @transform_14(%arg0: i32, %arg1: i32) -> (i32, i32) {
    %c0_i32 = arith.constant 0 : i32
    %c0_i32_0 = arith.constant 0 : i32
    %c0_i32_1 = arith.constant 0 : i32
    return %c0_i32, %c0_i32_0 : i32, i32
  }
  func.func @transform_15(%arg0: i32, %arg1: i32) -> (i32, i32) {
    %c0_i32 = arith.constant 0 : i32
    %c0_i32_0 = arith.constant 0 : i32
    %c0_i32_1 = arith.constant 0 : i32
    return %c0_i32, %c0_i32_0 : i32, i32
  }
  func.func @transform_16(%arg0: i32, %arg1: i32) -> (i32, i32) {
    %c0_i32 = arith.constant 0 : i32
    %c0_i32_0 = arith.constant 0 : i32
    %c0_i32_1 = arith.constant 0 : i32
    return %c0_i32, %c0_i32_0 : i32, i32
  }
  func.func @transform_17(%arg0: i32, %arg1: i32) -> (i32, i32, i32) {
    %c0_i32 = arith.constant 0 : i32
    %c0_i32_0 = arith.constant 0 : i32
    return %arg0, %arg1, %c0_i32 : i32, i32, i32
  }
}

</mosaic_0001>

<bundles_post_ra>
// kernel: tpu_custom_call.1
= control target key start
LH: loop header
LB: loop body
LE: loop exit
PB: predicated region body
PF: predicated region fallthrough
CT: control target
= control target key end

     0   :  { %s5154_s0 = inlined_call_operand.hbm [shape: f32[2,16,128], index: 0, kind: input, shape index: {}]   ;;  %s5155_s1 = inlined_call_operand.vmem [shape: f32[1,128], index: 1, kind: input, shape index: {}]   ;;  %s5156_s2 = inlined_call_operand.hbm [shape: f32[1,128], index: 2, kind: input, shape index: {}]   ;;  %s5157_s3 = inlined_call_operand.hbm [shape: bf16[128,128], index: 3, kind: input, shape index: {}]   ;;  %s5158_s4 = inlined_call_operand.hbm [shape: bf16[128,128], index: 4, kind: input, shape index: {}]   ;;  %s5159_s5 = inlined_call_operand.hbm [shape: bf16[128,128], index: 5, kind: input, shape index: {}]   ;;  %s5160_s6 = inlined_call_operand.vmem [shape: f32[1,128], index: 6, kind: input, shape index: {}]   ;;  %s5161_s7 = inlined_call_operand.vmem [shape: f32[1,128], index: 7, kind: input, shape index: {}]   ;;  %s5162_s8 = inlined_call_operand.vmem [shape: f32[1,128], index: 8, kind: input, shape index: {}]   ;;  %s5163_s9 = inlined_call_operand.hbm [shape: bf16[128,128], index: 9, kind: input, shape index: {}]   ;;  %s5164_s10 = inlined_call_operand.vmem [shape: f32[1,128], index: 10, kind: input, shape index: {}]   ;;  %s5165_s11 = inlined_call_operand.vmem [shape: f32[1,128], index: 11, kind: input, shape index: {}]   ;;  %s5166_s12 = inlined_call_operand.vmem [shape: f32[1,128], index: 12, kind: input, shape index: {}]   ;;  %s5167_s13 = inlined_call_operand.hbm [shape: bf16[128,256], index: 13, kind: input, shape index: {}]   ;;  %s5168_s14 = inlined_call_operand.vmem [shape: f32[1,256], index: 14, kind: input, shape index: {}]   ;;  %s5169_s15 = inlined_call_operand.hbm [shape: bf16[256,128], index: 15, kind: input, shape index: {}]   ;;  %s5170_s16 = inlined_call_operand.vmem [shape: f32[1,128], index: 16, kind: input, shape index: {}]   ;;  %s5171_s17 = inlined_call_operand.hbm [shape: f32[2,16,128], index: 17, kind: output, shape index: {}]  }
   0x1   :  { %5179 = sst [smem:[#allocation26_spill]] %s5154_s0 }
   0x2   :  { %5180 = sst [smem:[#allocation27_spill]] %s5155_s1 }
   0x3   :  { %5181 = sst [smem:[#allocation28_spill]] %s5156_s2 }
   0x4   :  { %5182 = sst [smem:[#allocation29_spill]] %s5157_s3 }
   0x5   :  { %5183 = sst [smem:[#allocation30_spill]] %s5158_s4 }
   0x6   :  { %5184 = sst [smem:[#allocation31_spill]] %s5159_s5 }
   0x7   :  { %5185 = sst [smem:[#allocation32_spill]] %s5163_s9 }
   0x8   :  { %5186 = sst [smem:[#allocation33_spill]] %s5167_s13 }
   0x9   :  { %5187 = sst [smem:[#allocation34_spill]] %s5168_s14 }
   0xa   :  { %5188 = sst [smem:[#allocation35_spill]] %s5169_s15 }
   0xb   :  { %5189 = sst [smem:[#allocation36_spill]] %s5170_s16 }
   0xc   :  { %5190 = sst [smem:[#allocation37_spill]] %s5171_s17 }
   0xd   :  { %22 = vsyncpa [#allocation3], 0 }
   0xe   :  { %24 = vsyncpa [#allocation3 + $0x1], 0 }
   0xf   :  { %25 = vsyncpa [#allocation6], 0 }
  0x10   :  { %26 = vsyncpa [#allocation9], 0 }
  0x11   :  { %27 = vsyncpa [#allocation12], 0 }
  0x12   :  { %28 = vsyncpa [#allocation15], 0 }
  0x13   :  { %29 = vsyncpa [#allocation4], 0 }
  0x14   :  { %31 = vsyncpa [#allocation4 + $0x1], 0  ;;  %s4462_s24 = smov 0   ;;  %s4464_s25 = smov 0  }
  0x15   :  { %s4466_s26 = smov 0   ;;  %s4468_s27 = smov 0  }
  0x16   :  { %s4470_s28 = smov 0   ;;  %s4472_s29 = smov 0  }
  0x17 LB: > { %5191 = sst [smem:[#allocation23_spill]] %s4339_s27  ;;  %s5172_s0 = sadd.s32 4294967295, %s4347_s29   ;;  %s4347_s29 = sphi %s4472_s29, %s37_s29   ;;  %s4343_s28 = sphi %s4470_s28, %s5224_s28   ;;  %s4339_s27 = sphi %s4468_s27, %s5223_s27   ;;  %s4335_s26 = sphi %s4466_s26, %s5227_s26   ;;  %s4331_s25 = sphi %s4464_s25, %s5226_s25   ;;  %s4327_s24 = sphi %s4462_s24, %s5225_s24  }
  0x18   : > { %5192 = sst [smem:[#allocation24_spill]] %s4343_s28  ;;  %p3425_p0 = scmp.ge.s32.totalorder %s4347_s29, 1 }
  0x19   : > { %p4496_p1 = scmp.eq.s32.totalorder %s5172_s0, 0  ;;  %p444_p2 = scmp.lt.s32.totalorder %s4347_s29, 3 }
  0x1a   : > { %s4349_s19 = smov [#allocation5]   ;;  %s4350_s21 = smov [#allocation8]  }
  0x1b   : > { %p4501_p3 = pnand %p3425_p0, %p444_p2  ;;  %s460_s1 = sshll.u32 %s4349_s19, 4  ;;  %s461_s1 = int_to_ptr.vmem [resolvable:$true] %s460_s1 }
  0x1c   : > { %s483_s22 = sshll.u32 %s4350_s21, 4  ;;  %s4351_s23 = smov [#allocation11]   ;;  %s4514_s22 = int_to_ptr.vmem [resolvable:$true] %s483_s22 }
  0x1d   : > { %p3785_p5 = pneg %p4501_p3  ;;  %s518_s0 = sshll.u32 %s4351_s23, 4  ;;  %s519_s0 = int_to_ptr.vmem [resolvable:$true] %s518_s0 }
  0x1e   : > { %s4052_s19 = scalar_lea.vmem %s461_s1, 16  ;;  %s4059_s16 = scalar_lea.vmem %s461_s1, 32 }
  0x1f   : > { %p4510_p6 = pnand %p3785_p5, %p4496_p1  ;;  %p4053_p8 = scmp.ne.s32.totalorder %s461_s1, %s4052_s19 }
  0x20   : > { %p4060_p11 = scmp.lt.s32.totalorder %s461_s1, %s461_s1  ;;  %p4061_p12 = scmp.lt.s32.totalorder %s4059_s16, %s4052_s19 }
  0x21   : > { %p4518_p7 = pneg %p4510_p6 }
  0x22   : > { %p4062_p13 = por %p4061_p12, %p4060_p11 }
  0x23   : > { %p4055_p9 = pnand %p4053_p8, %p4518_p7 }
  0x25   : > { %p4056_p10 = pneg %p4055_p9 }
  0x27   : > { %p4063_p0 = pnand %p4062_p13, %p4056_p10 }
  0x29   : > { %4066 = shalt.err (!%p4063_p0)
}
  0x2a   : > { %s5197_s2 = sld [smem:[#allocation28_spill]]  ;;  %s4078_s27 = scalar_lea.vmem %s4514_s22, 1024 }
  0x2b   : > { %p4079_p2 = scmp.ne.s32.totalorder %s4514_s22, %s4078_s27  ;;  %p4086_p9 = scmp.lt.s32.totalorder %s4514_s22, %s4514_s22 }
  0x2c   : > { %p4087_p11 = scmp.lt.s32.totalorder %s4078_s27, %s4078_s27 }
  0x2d   : > { %p4081_p5 = pnand %p4079_p2, %p4518_p7 }
  0x2e   : > { %p4088_p10 = por %p4087_p11, %p4086_p9 }
  0x2f   : > { %p4082_p8 = pneg %p4081_p5 }
  0x30   : > { %3788 = dma.hbm_to_vmem [thread:$0]  (!%p4510_p6), %s5197_s2, 16, %s461_s1, [#allocation6]  }
  0x31   : > { %p4089_p12 = pnand %p4088_p10, %p4082_p8 }
  0x33   : > { %4092 = shalt.err (!%p4089_p12)
}
  0x34   : > { %s4352_s16 = smov 64   ;;  %s4353_s19 = smov 4  }
  0x35   : > { %s5198_s4 = sld [smem:[#allocation30_spill]]  ;;  %s4104_s23 = scalar_lea.vmem %s519_s0, 1024 }
  0x36   : > { %p4105_p13 = scmp.ne.s32.totalorder %s519_s0, %s4104_s23  ;;  %p4112_p5 = scmp.lt.s32.totalorder %s519_s0, %s519_s0 }
  0x37   : > { %p4113_p8 = scmp.lt.s32.totalorder %s4104_s23, %s4104_s23 }
  0x38   : > { %p4107_p0 = pnand %p4105_p13, %p4518_p7 }
  0x39   : > { %p4114_p9 = por %p4113_p8, %p4112_p5 }
  0x3a   : > { %p4108_p2 = pneg %p4107_p0 }
  0x3b   : > { %3794 = dma.hbm_to_vmem [thread:$0]  (!%p4510_p6), %s5198_s4, 1024, %s4514_s22, [#allocation9], %s4352_s16, %s4352_s16, %s4353_s19  }
  0x3c   : > { %p4115_p11 = pnand %p4114_p9, %p4108_p2 }
  0x3e   : > { %4118 = shalt.err (!%p4115_p11)
}
  0x3f   : > { %s5199_s9 = sld [smem:[#allocation32_spill]]  ;;  %s4354_s22 = smov [#allocation7]  }
  0x40   : > { %s470_s1 = sshll.u32 %s4354_s22, 4  ;;  %s4355_s21 = smov [#allocation10]   ;;  %s471_s1 = int_to_ptr.vmem [resolvable:$true] %s470_s1 }
  0x41   : > { %s496_s4 = sshll.u32 %s4355_s21, 4  ;;  %s4130_s14 = scalar_lea.vmem %s471_s1, 1024  ;;  %s497_s4 = int_to_ptr.vmem [resolvable:$true] %s496_s4 }
  0x42   : > { %p4131_p10 = scmp.ne.s32.totalorder %s471_s1, %s4130_s14  ;;  %p4138_p0 = scmp.lt.s32.totalorder %s471_s1, %s471_s1 }
  0x43   : > { %p4139_p2 = scmp.lt.s32.totalorder %s4130_s14, %s4130_s14 }
  0x44   : > { %p4133_p12 = pnand %p4131_p10, %p4518_p7 }
  0x45   : > { %3800 = dma.hbm_to_vmem [thread:$0]  (!%p4510_p6), %s5199_s9, 1024, %s519_s0, [#allocation12], %s4352_s16, %s4352_s16, %s4353_s19  }
  0x46   : > { %p4134_p13 = pneg %p4133_p12  ;;  %p4140_p5 = por %p4139_p2, %p4138_p0 }
  0x48   : > { %p4141_p8 = pnand %p4140_p5, %p4134_p13 }
  0x4a   : > { %4144 = shalt.err (!%p4141_p8)
}
  0x4b   : > { %s5200_s3 = sld [smem:[#allocation29_spill]]  ;;  %s4156_s23 = scalar_lea.vmem %s497_s4, 1024 }
  0x4c   : > { %p4157_p9 = scmp.ne.s32.totalorder %s497_s4, %s4156_s23  ;;  %p4164_p12 = scmp.lt.s32.totalorder %s497_s4, %s497_s4 }
  0x4d   : > { %p4165_p0 = scmp.lt.s32.totalorder %s4156_s23, %s4156_s23 }
  0x4e   : > { %p4159_p11 = pnand %p4157_p9, %p4518_p7 }
  0x4f   : > { %p4166_p13 = por %p4165_p0, %p4164_p12 }
  0x50   : > { %p4160_p10 = pneg %p4159_p11 }
  0x51   : > { %3791 = dma.hbm_to_vmem [thread:$0]  (!%p4510_p6), %s5200_s3, 1024, %s471_s1, [#allocation6], %s4352_s16, %s4352_s16, %s4353_s19  }
  0x52   : > { %p4167_p2 = pnand %p4166_p13, %p4160_p10 }
  0x54   : > { %4170 = shalt.err (!%p4167_p2)
}
  0x55   : > { %s5201_s5 = sld [smem:[#allocation31_spill]]  ;;  %s4356_s22 = smov [#allocation13]  }
  0x56   : > { %s540_s1 = sshll.u32 %s4356_s22, 4  ;;  %s541_s1 = int_to_ptr.vmem [resolvable:$true] %s540_s1 }
  0x57   : > { %s4182_s21 = scalar_lea.vmem %s541_s1, 2048  ;;  %p4190_p11 = scmp.lt.s32.totalorder %s541_s1, %s541_s1 }
  0x58   : > { %p4183_p5 = scmp.ne.s32.totalorder %s541_s1, %s4182_s21  ;;  %p4191_p10 = scmp.lt.s32.totalorder %s4182_s21, %s4182_s21 }
  0x5a   : > { %p4185_p8 = pnand %p4183_p5, %p4518_p7  ;;  %p4192_p12 = por %p4191_p10, %p4190_p11 }
  0x5b   : > { %3797 = dma.hbm_to_vmem [thread:$0]  (!%p4510_p6), %s5201_s5, 1024, %s497_s4, [#allocation9], %s4352_s16, %s4352_s16, %s4353_s19  }
  0x5c   : > { %p4186_p9 = pneg %p4185_p8 }
  0x5e   : > { %p4193_p0 = pnand %p4192_p12, %p4186_p9 }
  0x60   : > { %4196 = shalt.err (!%p4193_p0)
}
  0x61   : > { %s5174_s2 = smov 128   ;;  %s5175_s0 = smov 8  }
  0x62   : > { %s5202_s13 = sld [smem:[#allocation33_spill]]  ;;  %s4359_s14 = smov [#allocation14]  }
  0x63   : > { %s556_s27 = sshll.u32 %s4359_s14, 4  ;;  %s557_s27 = int_to_ptr.vmem [resolvable:$true] %s556_s27 }
  0x64   : > { %s4208_s22 = scalar_lea.vmem %s557_s27, 2048  ;;  %p4216_p8 = scmp.lt.s32.totalorder %s557_s27, %s557_s27 }
  0x65   : > { %p4209_p13 = scmp.ne.s32.totalorder %s557_s27, %s4208_s22  ;;  %p4217_p9 = scmp.lt.s32.totalorder %s4208_s22, %s4208_s22 }
  0x67   : > { %p4211_p2 = pnand %p4209_p13, %p4518_p7  ;;  %p4218_p11 = por %p4217_p9, %p4216_p8 }
  0x68   : > { %3803 = dma.hbm_to_vmem [thread:$0]  (!%p4510_p6), %s5202_s13, 2048, %s541_s1, [#allocation12], %s5174_s2, %s5174_s2, %s5175_s0  }
  0x69   : > { %p4212_p5 = pneg %p4211_p2 }
  0x6b   : > { %p4219_p10 = pnand %p4218_p11, %p4212_p5 }
  0x6d   : > { %4222 = shalt.err (!%p4219_p10)
}
  0x6e   : > { %s5203_s15 = sld [smem:[#allocation35_spill]]  ;;  %s3424_s17 = sadd.s32 4294967294, %s4347_s29  }
  0x6f   : > { %s49_s20 = sadd.s32 1, %s4343_s28  ;;  %s56_s4 = sadd.s32 1, %s4335_s26 }
  0x70   : > { %p51_p7 = scmp.ge.s32.totalorder %s49_s20, 2  ;;  %p63_p12 = scmp.ne.s32.totalorder %s4335_s26, %s4331_s25 }
  0x71   : > { %p64_p0 = scmp.eq.s32.totalorder %s4347_s29, 0  ;;  %p69_p13 = scmp.ne.s32.totalorder %s4331_s25, %s4327_s24 }
  0x72   : > { %s5229_s20 = smov (%p51_p7, %s49_s20), 0  ;;  %s5207_s14 = sadd.s32 4294967295, %s4347_s29  }
  0x73   : > { %5204 = sst [smem:[#allocation25_spill]] %s5229_s20  ;;  %p4604_p2 = por %p64_p0, %p63_p12 }
  0x74   : > { %3806 = dma.hbm_to_vmem [thread:$0]  (!%p4510_p6), %s5203_s15, 2048, %s557_s27, [#allocation15], %s4352_s16, %s4352_s16, %s4353_s19  }
  0x75   : > { %p4610_p6 = por %p4496_p1, %p69_p13  ;;  %s53_s19 = ssub.s32 %s4343_s28, %s5229_s20 }
  0x76   : > { %p431_p5 = scmp.eq.s32.totalorder %s5207_s14, 1  ;;  %p54_p8 = scmp.eq.s32.totalorder %s53_s19, 0 }
  0x77   : > { %p437_p9 = scmp.eq.s32.totalorder %s3424_s17, 1  ;;  %p3822_p10 = scmp.lt.s32.totalorder %s4347_s29, 2 }
  0x78   : > { %p4618_p11 = por %p431_p5, %p63_p12  ;;  %s573_s1 = sand.u32 1, %s4335_s26  }
  0x79   : > { %s4624_s22 = scalar_select %p54_p8, %s4335_s26, %s56_s4  }
  0x7a   : > { %s5208_s27 = scalar_select %p4618_p11, 1, 0 }
  0x7b   : > { %p4626_p7 = por %p437_p9, %p69_p13  ;;  %s3434_s2 = sshll.u32 %s573_s1, 4 }
  0x7c   : > { %s3549_s0 = sshll.u32 %s4343_s28, 8  ;;  %s5210_s9 = sld [smem:[#allocation26_spill]] }
  0x7d   : > { %s5209_s21 = scalar_select %p4626_p7, 1, 0 }
  0x7e   : > { %s577_s19 = scalar_lea.vmem [#allocation2], %s3434_s2  ;;  %p4637_p12 = pnand %p3822_p10, %p4604_p2 }
  0x7f   : > { %s584_s17 = sshll.u32 %s577_s19, 4  ;;  %s574_s4 = scalar_lea.sflag [#allocation3], %s573_s1  ;;  %s585_s17 = int_to_ptr.vmem [resolvable:$true] %s584_s17 }
  0x80   : > { %p4225_p0 = pneg %p4637_p12  ;;  %s4236_s15 = scalar_lea.vmem %s585_s17, 256 }
  0x81   : > { %p4237_p13 = scmp.ne.s32.totalorder %s585_s17, %s4236_s15  ;;  %s4360_s20 = smov [#allocation2]  }
  0x82   : > { %s583_s14 = scalar_lea.hbm %s5210_s9, %s3549_s0  ;;  %s4241_s28 = sshll.u32 %s4360_s20, 4  ;;  %s4242_s28 = int_to_ptr.vmem [resolvable:$false] %s4241_s28 }
  0x83   : > { %p4239_p5 = pnand %p4237_p13, %p4225_p0  ;;  %s4243_s3 = scalar_lea.vmem %s4242_s28, 512 }
  0x84   : > { %p4244_p9 = scmp.lt.s32.totalorder %s585_s17, %s4242_s28  ;;  %p4245_p4 = scmp.lt.s32.totalorder %s4243_s3, %s4236_s15 }
  0x85   : > { %p4240_p8 = pneg %p4239_p5 }
  0x86   : > { %p4246_p7 = por %p4245_p4, %p4244_p9 }
  0x88   : > { %p4247_p11 = pnand %p4246_p7, %p4240_p8 }
  0x8a   : > { %4250 = shalt.err (!%p4247_p11)
}
  0x8b   : > { %s5212_s5 = smov 8   ;;  %s5213_s9 = smov 128  }
  0x8c   : > { %3810 = dma.hbm_to_vmem [thread:$0]  (!%p4637_p12), %s583_s14, 256, %s585_s17, %s574_s4, %s5213_s9, %s5213_s9, %s5212_s5  }
  0x8d   : > { %596 = sbr.rel (%p4501_p3) target bundleno = 2701 (0xa8d), region = 88  ;;  %s4651_s2 = sand.u32 (!%p4501_p3), 1, %s4331_s25  }
  0x8e   : > { %s3438_s15 = sshll.u32 (!%p4501_p3), %s4651_s2, 4  ;;  %s599_s28 = scalar_lea.sflag (!%p4501_p3), [#allocation3], %s4651_s2 }
  0x8f   : > { %s4657_s0 = scalar_lea.vmem (!%p4501_p3), [#allocation2], %s3438_s15 }
  0x92   : > { %4302 = dma.done.wait (%p4610_p6), %s599_s28, 256  }
  0x93   : > { %4304 = vsyncadd (%p4610_p6), %s599_s28, 4294967040 }
  0x94   : > { %4306 = dma.done.wait (%p4496_p1), [#allocation6], 1040  }
  0x95   : > { %4308 = vsyncadd (%p4496_p1), [#allocation6], 4294966256 }
  0x96   : > { %4310 = dma.done.wait (%p4496_p1), [#allocation9], 2048  }
  0x97   : > { %4312 = vsyncadd (%p4496_p1), [#allocation9], 4294965248 }
  0x98   : > { %4314 = dma.done.wait (%p4496_p1), [#allocation12], 3072  }
  0x99   : > { %4316 = vsyncadd (%p4496_p1), [#allocation12], 4294964224 }
  0x9a   : > { %4318 = dma.done.wait (%p4496_p1), [#allocation15], 2048  }
  0x9b   : > { %4320 = vsyncadd (%p4496_p1), [#allocation15], 4294965248  ;;  %v684_v0 = vld [vmem:[%s4657_s0] sm:$0xff]  ;;  %v685_v1 = vld [vmem:[%s4657_s0 + $0x8] sm:$0xff]  ;;  %v4361_v3 = vmov 0.0   ;;  %vm4362_vm0 = vmmov 0  }
  0x9c   : > { %691 = vadd.xlane.f32.xlu0 %v684_v0  ;;  %731 = vadd.xlane.f32.xlu1 %v684_v0  ;;  %v3915_v2 = vld [vmem:[#allocation8 + $0x38] sm:$0xff]   ;;  %v3917_v21 = vld [vmem:[#allocation8 + $0x30] sm:$0xff]   ;;  %v3919_v23 = vld [vmem:[#allocation8 + $0x28] sm:$0xff]   ;;  %s5214_s18 = sld [smem:[#allocation27_spill]]  ;;  %s4363_s16 = smov 64   ;;  %vm1982_vm1 = vcmask 261120  }
  0x9d   : > { %3645 = vmatprep.subr.bf16.mxu1 %v4361_v3  ;;  %3625 = vmatprep.subr.bf16.mxu0 %v4361_v3  ;;  %v3916_v20 = vld [vmem:[#allocation7 + $0x38] sm:$0xff]   ;;  %v3918_v22 = vld [vmem:[#allocation7 + $0x30] sm:$0xff]   ;;  %v3920_v24 = vld [vmem:[#allocation7 + $0x28] sm:$0xff]   ;;  %s4364_s1 = smov 96   ;;  %s4365_s17 = smov 32   ;;  %vm2171_vm2 = vcmask 130048  }
  0x9e   : > { %3646 = vmatpush3.bf16.msra.mxu1 %v3915_v2  ;;  %3626 = vmatpush3.bf16.msra.mxu0 %v3916_v20  ;;  %v3921_v25 = vld [vmem:[#allocation8 + $0x20] sm:$0xff]   ;;  %v3923_v27 = vld [vmem:[#allocation8 + $0x18] sm:$0xff]   ;;  %v3925_v29 = vld [vmem:[#allocation8 + $0x10] sm:$0xff]   ;;  %vm2738_vm3 = vcmask 523264   ;;  %vm2741_vm4 = vcmask 785408   ;;  %s5215_s23 = sld [smem:[#allocation34_spill]] }
  0x9f   : > { %3647 = vmatprep.subr.bf16.mxu1 %v4361_v3  ;;  %3627 = vmatprep.subr.bf16.mxu0 %v4361_v3  ;;  %v3922_v26 = vld [vmem:[#allocation7 + $0x20] sm:$0xff]   ;;  %v3924_v28 = vld [vmem:[#allocation7 + $0x18] sm:$0xff]   ;;  %v3926_v30 = vld [vmem:[#allocation7 + $0x10] sm:$0xff]   ;;  %s5217_s19 = sld [smem:[#allocation36_spill]]  ;;  %p5220_p3 = scmp.ne.s32.totalorder %s5208_s27, 0 }
  0xa0   : > { %693 = vadd.xlane.f32.xlu0 %v685_v1  ;;  %733 = vadd.xlane.f32.xlu1 %v685_v1  ;;  %v3927_v31 = vld [vmem:[#allocation8 + $0x8] sm:$0xff]   ;;  %v3929_v33 = vld [vmem:[#allocation8] sm:$0xff]   ;;  %v3448_v54 = vld [vmem:[#allocation5] ss:$0 sm:$0xff]  ;;  %s5218_s28 = sld [smem:[#allocation37_spill]] }
  0xa1   : > { %3661 = vmatprep.mubr.msk.bf16.mxu1 %vm4362_vm0, %v4361_v3  ;;  %3641 = vmatprep.mubr.msk.bf16.mxu0 %vm4362_vm0, %v4361_v3  ;;  %v3928_v32 = vld [vmem:[#allocation7 + $0x8] sm:$0xff]   ;;  %v3930_v34 = vld [vmem:[#allocation7] sm:$0xff]   ;;  %v3931_v2 = vld [vmem:[#allocation10 + $0x38] sm:$0xff]  }
  0xa2   : > { %3648 = vmatpush3.bf16.msra.mxu1 %v3917_v21  ;;  %3628 = vmatpush3.bf16.msra.mxu0 %v3918_v22  ;;  %v3447_v49 = vld [vmem:[%s5214_s18] ss:$0 sm:$0xff]  ;;  %s4369_s18 = smov [#allocation16]  }
  0xa3   : > { %3649 = vmatprep.subr.bf16.mxu1 %v4361_v3  ;;  %3629 = vmatprep.subr.bf16.mxu0 %v4361_v3  ;;  %s4255_s20 = sshll.u32 %s4369_s18, 4  ;;  %s4256_s20 = int_to_ptr.vmem [resolvable:$false] %s4255_s20 }
  0xa6   : > { %3650 = vmatpush3.bf16.msra.mxu1 %v3919_v23  ;;  %3630 = vmatpush3.bf16.msra.mxu0 %v3920_v24 }
  0xa7   : > { %3651 = vmatprep.subr.bf16.mxu1 %v4361_v3  ;;  %3631 = vmatprep.subr.bf16.mxu0 %v4361_v3 }
  0xaa   : > { %3652 = vmatpush3.bf16.msra.mxu1 %v3921_v25  ;;  %3632 = vmatpush3.bf16.msra.mxu0 %v3922_v26 }
  0xab   : > { %3653 = vmatprep.subr.bf16.mxu1 %v4361_v3  ;;  %3633 = vmatprep.subr.bf16.mxu0 %v4361_v3 }
  0xae   : > { %3654 = vmatpush3.bf16.msra.mxu1 %v3923_v27  ;;  %3634 = vmatpush3.bf16.msra.mxu0 %v3924_v28 }
  0xaf   : > { %3655 = vmatprep.subr.bf16.mxu1 %v4361_v3  ;;  %3635 = vmatprep.subr.bf16.mxu0 %v4361_v3 }
  0xb2   : > { %3656 = vmatpush3.bf16.msra.mxu1 %v3925_v29  ;;  %3636 = vmatpush3.bf16.msra.mxu0 %v3926_v30  ;;  %v4366_v30 = vmov 1983009808  }
  0xb3   : > { %3657 = vmatprep.subr.bf16.mxu1 %v4361_v3  ;;  %3637 = vmatprep.subr.bf16.mxu0 %v4361_v3 }
  0xb6   : > { %3658 = vmatpush3.bf16.msra.mxu1 %v3927_v31  ;;  %3638 = vmatpush3.bf16.msra.mxu0 %v3928_v32  ;;  %v1117_v31 = vunpack.c.l.s4 %v4366_v30  ;;  %v1119_v32 = vlaneseq }
  0xb7   : > { %3659 = vmatprep.subr.bf16.mxu1 %v4361_v3  ;;  %3639 = vmatprep.subr.bf16.mxu0 %v4361_v3 }
  0xba   : > { %3660 = vmatpush3.bf16.msra.mxu1 %v3929_v33  ;;  %3640 = vmatpush3.bf16.msra.mxu0 %v3930_v34  ;;  %v4367_v33 = vmov 1934713408  }
  0xbb   : > { %3685 = vmatprep.subr.bf16.mxu1 %v4361_v3  ;;  %3665 = vmatprep.subr.bf16.mxu0 %v4361_v3  ;;  %v1149_v34 = vunpack.c.l.s4 %v4367_v33 }
 0x125   : > { %v692_v4 = vpop.xlane.xlu0 %691  ;;  %v732_v5 = vpop.xlane.xlu1 %731 }
 0x126   : > { %v696_v6 = vmul.f32 0.0078125, %v692_v4  ;;  %v735_v7 = vmul.f32 0.0078125, %v732_v5  ;;  %v3932_v5 = vld [vmem:[#allocation10 + $0x30] sm:$0xff]  }
 0x128   : > { %v4684_v8 = vsub.f32 %v684_v0, %v696_v6  ;;  %v4686_v9 = vsub.f32 %v684_v0, %v735_v7  ;;  %v3933_v6 = vld [vmem:[#allocation10 + $0x28] sm:$0xff]   ;;  %v3934_v7 = vld [vmem:[#allocation10 + $0x20] sm:$0xff]  }
 0x129   : > { %v694_v10 = vpop.xlane.xlu0 %693  ;;  %v734_v11 = vpop.xlane.xlu1 %733 }
 0x12a   : > { %v697_v12 = vmul.f32 0.0078125, %v694_v10  ;;  %v700_v13 = vmul.f32 %v4684_v8, %v4684_v8  ;;  %v736_v14 = vmul.f32 0.0078125, %v734_v11  ;;  %v739_v17 = vmul.f32 %v4686_v9, %v4686_v9  ;;  %v3937_v10 = vld [vmem:[#allocation10 + $0x8] sm:$0xff]   ;;  %v3938_v11 = vld [vmem:[#allocation10] sm:$0xff]  }
 0x12c   : > { %v4690_v15 = vsub.f32 %v685_v1, %v697_v12  ;;  %702 = vadd.xlane.f32.xlu0 %v700_v13  ;;  %v4692_v16 = vsub.f32 %v685_v1, %v736_v14  ;;  %v3458_v12 = vld [vmem:[%s5161_s7] ss:$0 sm:$0xff] }
 0x12e   : > { %v701_v18 = vmul.f32 %v4690_v15, %v4690_v15  ;;  %v740_v19 = vmul.f32 %v4692_v16, %v4692_v16 }
 0x130   : > { %741 = vadd.xlane.f32.xlu0 %v739_v17  ;;  %704 = vadd.xlane.f32.xlu1 %v701_v18 }
 0x134   : > { %743 = vadd.xlane.f32.xlu1 %v740_v19  ;;  %v3449_v19 = vld [vmem:[%s5160_s6] ss:$0 sm:$0xff] }
 0x1b5   : > { %v703_v35 = vpop.xlane.xlu0 %702 }
 0x1b6   : > { %v706_v36 = vmul.f32 0.0078125, %v703_v35  ;;  %v1118_v35 = vunpack.c.0.s8 %v1117_v31 }
 0x1b8   : > { %v708_v37 = vadd.f32 1e-05, %v706_v36  ;;  %v4777_v36 = vshrl.u32 %v1119_v32, 7 }
 0x1b9   : > { %v705_v38 = vpop.xlane.xlu1 %704  ;;  %v742_v39 = vpop.xlane.xlu0 %741 }
 0x1ba   : > { %3987 = vrsqrt.f32 %v708_v37  ;;  %v707_v40 = vmul.f32 0.0078125, %v705_v38  ;;  %v745_v41 = vmul.f32 0.0078125, %v742_v39  ;;  %v1150_v39 = vunpack.c.0.s8 %v1149_v34 }
 0x1bc   : > { %v709_v42 = vadd.f32 1e-05, %v707_v40  ;;  %v747_v43 = vadd.f32 1e-05, %v745_v41  ;;  %v4780_v40 = vsub.s32 %v1118_v35, %v4777_v36 }
 0x1bd   : > { %v744_v44 = vpop.xlane.xlu1 %743 }
 0x1be   : > { %3989 = vrsqrt.f32 %v709_v42  ;;  %v746_v45 = vmul.f32 0.0078125, %v744_v44 }
 0x1bf   : > { %3991 = vrsqrt.f32 %v747_v43 }
 0x1c0   : > { %v748_v46 = vadd.f32 1e-05, %v746_v45 }
 0x1c2   : > { %3993 = vrsqrt.f32 %v748_v46 }
 0x1c7   : > { %v3988_v47 = vpop.eup %3987 }
 0x1c8   : > { %v712_v48 = vmul.f32 %v3988_v47, %v4684_v8  ;;  %v3935_v8 = vld [vmem:[#allocation10 + $0x18] sm:$0xff]   ;;  %v4783_v47 = vsub.s32 %v1150_v39, %v4777_v36 }
 0x1ca   : > { %v720_v53 = vmul.f32 %v3447_v49, %v712_v48 }
 0x1cb   : > { %v3990_v50 = vpop.eup %3989 }
 0x1cc   : > { %v3992_v51 = vpop.eup %3991  ;;  %v713_v52 = vmul.f32 %v3990_v50, %v4690_v15  ;;  %v728_v58 = vadd.f32 %v3448_v54, %v720_v53 }
 0x1cd   : > { %v751_v55 = vmul.f32 %v3992_v51, %v4686_v9  ;;  %v3936_v9 = vld [vmem:[#allocation10 + $0x10] sm:$0xff]  }
 0x1ce   : > { %v721_v56 = vmul.f32 %v3447_v49, %v713_v52 }
 0x1cf   : > { %v3994_v57 = vpop.eup %3993  ;;  %v753_v61 = vmul.f32 %v3447_v49, %v751_v55 }
 0x1d0   : > { %v729_v59 = vadd.f32 %v3448_v54, %v721_v56  ;;  %v752_v60 = vmul.f32 %v3994_v57, %v4692_v16 }
 0x1d1   : > { %v755_v0 = vadd.f32 %v3448_v54, %v753_v61 }
 0x1d2   : > { %v730_v62 = vpack.c.bf16 %v729_v59, %v728_v58  ;;  %v754_v63 = vmul.f32 %v3447_v49, %v752_v60 }
 0x1d4   : > { %3662 = vmatmul.mubr.bf16.vlgmr.msra.gmra.mxu1 %v730_v62  ;;  %v756_v1 = vadd.f32 %v3448_v54, %v754_v63 }
 0x1d5   : > { %3687 = vmatprep.mubr.msk.bf16.mxu1 %vm4362_vm0, %v4361_v3 }
 0x1d6   : > { %v757_v4 = vpack.c.bf16 %v756_v1, %v755_v0 }
 0x1d8   : > { %3642 = vmatmul.mubr.bf16.vlgmr.msra.gmra.mxu0 %v757_v4 }
 0x1d9   : > { %3666 = vmatpush3.bf16.msra.mxu0 %v3931_v2  ;;  %3681 = vmatprep.mubr.msk.bf16.mxu0 %vm4362_vm0, %v4361_v3 }
 0x1da   : > { %3667 = vmatprep.subr.bf16.mxu0 %v4361_v3 }
 0x1dd   : > { %3668 = vmatpush3.bf16.msra.mxu0 %v3932_v5 }
 0x1de   : > { %3669 = vmatprep.subr.bf16.mxu0 %v4361_v3 }
 0x1e1   : > { %3670 = vmatpush3.bf16.msra.mxu0 %v3933_v6 }
 0x1e2   : > { %3671 = vmatprep.subr.bf16.mxu0 %v4361_v3 }
 0x1e5   : > { %3672 = vmatpush3.bf16.msra.mxu0 %v3934_v7 }
 0x1e6   : > { %3673 = vmatprep.subr.bf16.mxu0 %v4361_v3 }
 0x1e9   : > { %3674 = vmatpush3.bf16.msra.mxu0 %v3935_v8 }
 0x1ea   : > { %3675 = vmatprep.subr.bf16.mxu0 %v4361_v3 }
 0x1ed   : > { %3676 = vmatpush3.bf16.msra.mxu0 %v3936_v9 }
 0x1ee   : > { %3677 = vmatprep.subr.bf16.mxu0 %v4361_v3 }
 0x1f1   : > { %3678 = vmatpush3.bf16.msra.mxu0 %v3937_v10 }
 0x1f2   : > { %3679 = vmatprep.subr.bf16.mxu0 %v4361_v3 }
 0x1f5   : > { %3680 = vmatpush3.bf16.msra.mxu0 %v3938_v11 }
 0x1f6   : > { %3733 = vmatprep.subr.bf16.mxu0 %v4361_v3 }
 0x1f8   : > { %3682 = vmatmul.mubr.bf16.vlgmr.msra.gmra.mxu0 %v730_v62 }
 0x1f9   : > { %3749 = vmatprep.mubr.msk.bf16.mxu0 %vm4362_vm0, %v4361_v3 }
 0x294   : > { %v975_v13 = vpop.f32.mrf.mxu1 }
 0x295   : > { %v976_v14 = vadd.f32 %v3458_v12, %v975_v13 }
 0x296   : > { %v3663_v15 = vpop.f32.mrf.mxu1 }
 0x297   : > { %1398 = vrot.lane.b32.xlu1 %v976_v14, %s4363_s16  ;;  %1392 = vrot.lane.b32.xlu0 %v976_v14, %s4364_s1 }
 0x298   : > { %v863_v16 = vpop.f32.mrf.mxu0  ;;  %v978_v17 = vpop.f32.mrf.mxu1 }
 0x299   : > { %v4745_v18 = vadd.f32 %v3458_v12, %v978_v17  ;;  %v4753_v23 = vadd.f32 %v3449_v19, %v863_v16 }
 0x29a   : > { %v3643_v20 = vpop.f32.mrf.mxu0  ;;  %v3664_v21 = vpop.f32.mrf.mxu1 }
 0x29b   : > { %1404 = vrot.lane.b32.xlu0 %v976_v14, %s4365_s17  ;;  %1394 = vrot.lane.b32.xlu1 %v4745_v18, %s4364_s1 }
 0x29c   : > { %v866_v22 = vpop.f32.mrf.mxu0 }
 0x29d   : > { %v4763_v25 = vadd.f32 %v3449_v19, %v866_v22 }
 0x29e   : > { %v3644_v24 = vpop.f32.mrf.mxu0 }
 0x29f   : > { %1400 = vrot.lane.b32.xlu1 %v4745_v18, %s4363_s16  ;;  %1096 = vrot.lane.b32.xlu0 %v4753_v23, %s4364_s1 }
 0x2a3   : > { %1406 = vrot.lane.b32.xlu1 %v4745_v18, %s4365_s17  ;;  %1102 = vrot.lane.b32.xlu0 %v4753_v23, %s4363_s16 }
 0x2a7   : > { %1108 = vrot.lane.b32.xlu0 %v4753_v23, %s4365_s17  ;;  %1098 = vrot.lane.b32.xlu1 %v4763_v25, %s4364_s1 }
 0x2ab   : > { %1104 = vrot.lane.b32.xlu1 %v4763_v25, %s4363_s16 }
 0x2af   : > { %1110 = vrot.lane.b32.xlu1 %v4763_v25, %s4365_s17 }
 0x2b8   : > { %v4773_v26 = vpop.f32.mrf.mxu0 }
 0x2ba   : > { %v3683_v27 = vpop.f32.mrf.mxu0 }
 0x2bc   : > { %v4775_v28 = vpop.f32.mrf.mxu0 }
 0x2be   : > { %v3684_v29 = vpop.f32.mrf.mxu0 }
 0x309   : > { %v1399_v37 = vpop.permute.xlu1 %1398  ;;  %v1393_v38 = vpop.permute.xlu0 %1392 }
 0x30a   : > { %v1410_v41 = vcombine.low %v976_v14, %v1399_v37  ;;  %v1411_v42 = vcombine.high %v976_v14, %v1399_v37 }
 0x30c   : > { %v1418_v48 = vrot.slane %v1410_v41, %v4780_v40  ;;  %v1425_v49 = vrot.slane %v1411_v42, %v4780_v40 }
 0x30d   : > { %v1395_v43 = vpop.permute.xlu1 %1394  ;;  %v1405_v44 = vpop.permute.xlu0 %1404 }
 0x30e   : > { %v1426_v45 = vcombine.low %v1393_v38, %v1405_v44  ;;  %v1427_v46 = vcombine.high %v1393_v38, %v1405_v44 }
 0x310   : > { %v1434_v50 = vrot.slane %v1426_v45, %v4780_v40  ;;  %v1441_v51 = vrot.slane %v1427_v46, %v4780_v40 }
 0x311   : > { %v1401_v52 = vpop.permute.xlu1 %1400  ;;  %v1097_v53 = vpop.permute.xlu0 %1096 }
 0x312   : > { %v1442_v54 = vcombine.low %v1418_v48, %v1434_v50  ;;  %v1443_v55 = vcombine.high %v1418_v48, %v1434_v50  ;;  %v1458_v56 = vcombine.low %v1425_v49, %v1441_v51  ;;  %v1459_v57 = vcombine.high %v1425_v49, %v1441_v51 }
 0x313   : > { %v1478_v58 = vcombine.low %v4745_v18, %v1401_v52  ;;  %v1479_v59 = vcombine.high %v4745_v18, %v1401_v52 }
 0x314   : > { %v1450_v60 = vrot.slane %v1442_v54, %v4783_v47  ;;  %v1457_v61 = vrot.slane %v1443_v55, %v4783_v47  ;;  %v1466_v62 = vrot.slane %v1458_v56, %v4783_v47  ;;  %v1473_v63 = vrot.slane %v1459_v57, %v4783_v47 }
 0x315   : > { %v1407_v0 = vpop.permute.xlu1 %1406  ;;  %v1103_v1 = vpop.permute.xlu0 %1102  ;;  %v1486_v9 = vrot.slane %v1478_v58, %v4780_v40  ;;  %v1493_v10 = vrot.slane %v1479_v59, %v4780_v40 }
 0x316   : > { %v1546_v2 = vcombine.low %v1450_v60, %v1457_v61  ;;  %v3480_v4 = vcombine.high %v1450_v60, %v1457_v61  ;;  %v1562_v5 = vcombine.low %v1466_v62, %v1473_v63  ;;  %v3481_v6 = vcombine.high %v1466_v62, %v1473_v63 }
 0x317   : > { %v1494_v7 = vcombine.low %v1395_v43, %v1407_v0  ;;  %v1495_v8 = vcombine.high %v1395_v43, %v1407_v0  ;;  %v1114_v11 = vcombine.low %v4753_v23, %v1103_v1  ;;  %v1115_v12 = vcombine.high %v4753_v23, %v1103_v1 }
 0x318   : > { %v4800_v13 = vrot.slane %v1546_v2, %v4780_v40  ;;  %v4803_v14 = vrot.slane %v3480_v4, %v4780_v40  ;;  %v4808_v19 = vrot.slane %v1562_v5, %v4780_v40  ;;  %v4811_v20 = vrot.slane %v3481_v6, %v4780_v40 }
 0x319   : > { %v1502_v15 = vrot.slane %v1494_v7, %v4780_v40  ;;  %v1509_v16 = vrot.slane %v1495_v8, %v4780_v40  ;;  %v1099_v17 = vpop.permute.xlu1 %1098  ;;  %v1109_v18 = vpop.permute.xlu0 %1108  ;;  %v1122_v30 = vrot.slane %v1114_v11, %v4780_v40  ;;  %v1129_v31 = vrot.slane %v1115_v12, %v4780_v40 }
 0x31a   : > { %v1130_v21 = vcombine.low %v1097_v53, %v1109_v18  ;;  %v1131_v22 = vcombine.high %v1097_v53, %v1109_v18  ;;  %v1578_v51 = vcombine.low %v4800_v13, %v4803_v14  ;;  %v1594_v52 = vcombine.low %v4808_v19, %v4811_v20 }
 0x31b   : > { %v1510_v23 = vcombine.low %v1486_v9, %v1502_v15  ;;  %v1511_v24 = vcombine.high %v1486_v9, %v1502_v15  ;;  %v1526_v27 = vcombine.low %v1493_v10, %v1509_v16  ;;  %v1527_v29 = vcombine.high %v1493_v10, %v1509_v16 }
 0x31c   : > { %v1138_v32 = vrot.slane %v1130_v21, %v4780_v40  ;;  %v1145_v33 = vrot.slane %v1131_v22, %v4780_v40 }
 0x31d   : > { %v1518_v34 = vrot.slane %v1510_v23, %v4783_v47  ;;  %v1525_v35 = vrot.slane %v1511_v24, %v4783_v47  ;;  %v1534_v37 = vrot.slane %v1526_v27, %v4783_v47  ;;  %v1541_v38 = vrot.slane %v1527_v29, %v4783_v47  ;;  %v1105_v39 = vpop.permute.xlu1 %1104 }
 0x31e   : > { %v1146_v41 = vcombine.low %v1122_v30, %v1138_v32  ;;  %v1147_v42 = vcombine.high %v1122_v30, %v1138_v32  ;;  %v1162_v43 = vcombine.low %v1129_v31, %v1145_v33  ;;  %v1163_v44 = vcombine.high %v1129_v31, %v1145_v33 }
 0x31f   : > { %v1614_v53 = vcombine.low %v1518_v34, %v1525_v35  ;;  %v3482_v54 = vcombine.high %v1518_v34, %v1525_v35  ;;  %v1630_v55 = vcombine.low %v1534_v37, %v1541_v38  ;;  %v3483_v56 = vcombine.high %v1534_v37, %v1541_v38 }
 0x320   : > { %v1154_v45 = vrot.slane %v1146_v41, %v4783_v47  ;;  %v1161_v46 = vrot.slane %v1147_v42, %v4783_v47  ;;  %v1170_v48 = vrot.slane %v1162_v43, %v4783_v47  ;;  %v1177_v49 = vrot.slane %v1163_v44, %v4783_v47 }
 0x321   : > { %v1111_v50 = vpop.permute.xlu1 %1110  ;;  %v1182_v57 = vcombine.low %v4763_v25, %v1105_v39  ;;  %v1183_v58 = vcombine.high %v4763_v25, %v1105_v39  ;;  %v1621_v6 = vrot.slane %v1614_v53, %v4780_v40  ;;  %v1629_v7 = vrot.slane %v3482_v54, %v4780_v40 }
 0x322   : > { %v1198_v59 = vcombine.low %v1099_v17, %v1111_v50  ;;  %v1199_v60 = vcombine.high %v1099_v17, %v1111_v50  ;;  %v1250_v61 = vcombine.low %v1154_v45, %v1161_v46  ;;  %v3476_v62 = vcombine.high %v1154_v45, %v1161_v46 }
 0x323   : > { %v1266_v63 = vcombine.low %v1170_v48, %v1177_v49  ;;  %v3477_v0 = vcombine.high %v1170_v48, %v1177_v49  ;;  %v1190_v1 = vrot.slane %v1182_v57, %v4780_v40  ;;  %v1197_v2 = vrot.slane %v1183_v58, %v4780_v40 }
 0x324   : > { %v1206_v4 = vrot.slane %v1198_v59, %v4780_v40  ;;  %v1213_v5 = vrot.slane %v1199_v60, %v4780_v40  ;;  %v1637_v25 = vrot.slane %v1630_v55, %v4780_v40  ;;  %v1645_v8 = vrot.slane %v3483_v56, %v4780_v40 }
 0x325   : > { %v4840_v15 = vrot.slane %v1250_v61, %v4780_v40  ;;  %v4843_v16 = vrot.slane %v3476_v62, %v4780_v40  ;;  %v4846_v17 = vrot.slane %v1266_v63, %v4780_v40  ;;  %v4849_v18 = vrot.slane %v3477_v0, %v4780_v40 }
 0x326   : > { %v1214_v9 = vcombine.low %v1190_v1, %v1206_v4  ;;  %v1215_v10 = vcombine.high %v1190_v1, %v1206_v4  ;;  %v1230_v11 = vcombine.low %v1197_v2, %v1213_v5  ;;  %v1231_v12 = vcombine.high %v1197_v2, %v1213_v5 }
 0x327   : > { %v1586_v27 = vrot.slane %v1578_v51, %v4783_v47  ;;  %v1602_v29 = vrot.slane %v1594_v52, %v4783_v47  ;;  %v1646_v30 = vcombine.low %v1621_v6, %v1629_v7  ;;  %v1662_v31 = vcombine.low %v1637_v25, %v1645_v8 }
 0x328   : > { %v1222_v21 = vrot.slane %v1214_v9, %v4783_v47  ;;  %v1229_v22 = vrot.slane %v1215_v10, %v4783_v47  ;;  %v1238_v23 = vrot.slane %v1230_v11, %v4783_v47  ;;  %v1245_v24 = vrot.slane %v1231_v12, %v4783_v47 }
 0x329   : > { %v1282_v37 = vcombine.low %v4840_v15, %v4843_v16  ;;  %v1298_v38 = vcombine.low %v4846_v17, %v4849_v18  ;;  %v1654_v39 = vrot.slane %v1646_v30, %v4783_v47  ;;  %v1670_v41 = vrot.slane %v1662_v31, %v4783_v47 }
 0x32a   : > { %v1318_v32 = vcombine.low %v1222_v21, %v1229_v22  ;;  %v3478_v33 = vcombine.high %v1222_v21, %v1229_v22  ;;  %v1334_v34 = vcombine.low %v1238_v23, %v1245_v24  ;;  %v3479_v35 = vcombine.high %v1238_v23, %v1245_v24 }
 0x32b   : > { %v1610_v46 = vcombine.low %v1586_v27, %v1602_v29  ;;  %v1678_v48 = vcombine.low %v1654_v39, %v1670_v41  ;;  %v1290_v51 = vrot.slane %v1282_v37, %v4783_v47  ;;  %v1306_v52 = vrot.slane %v1298_v38, %v4783_v47 }
 0x32c   : > { %v1325_v42 = vrot.slane %v1318_v32, %v4780_v40  ;;  %v1333_v43 = vrot.slane %v3478_v33, %v4780_v40  ;;  %v1341_v44 = vrot.slane %v1334_v34, %v4780_v40  ;;  %v1349_v45 = vrot.slane %v3479_v35, %v4780_v40 }
 0x32d   : > { %v1682_v53 = vpack.c.bf16 %v1678_v48, %v1610_v46  ;;  %v1679_v57 = vcombine.high %v1654_v39, %v1670_v41  ;;  %v1647_v58 = vcombine.high %v1621_v6, %v1629_v7  ;;  %v1663_v60 = vcombine.high %v1637_v25, %v1645_v8 }
 0x32e   : > { %v1350_v49 = vcombine.low %v1325_v42, %v1333_v43  ;;  %v1366_v50 = vcombine.low %v1341_v44, %v1349_v45  ;;  %v1314_v61 = vcombine.low %v1290_v51, %v1306_v52  ;;  %v1611_v62 = vcombine.high %v1586_v27, %v1602_v29 }
 0x32f   : > { %v1987_v56 = vsel %vm1982_vm1, %v1682_v53, 0  ;;  %v1579_v63 = vcombine.high %v4800_v13, %v4803_v14  ;;  %v1595_v0 = vcombine.high %v4808_v19, %v4811_v20  ;;  %v1661_v4 = vrot.slane %v1647_v58, %v4783_v47 }
 0x330   : > { %v1358_v54 = vrot.slane %v1350_v49, %v4783_v47  ;;  %v1374_v55 = vrot.slane %v1366_v50, %v4783_v47  ;;  %3686 = vmatpush3.bf16.xpose.msra.mxu1 %v1987_v56  ;;  %v1683_v2 = vpack.c.bf16 %v1679_v57, %v1611_v62  ;;  %v1677_v5 = vrot.slane %v1663_v60, %v4783_v47  ;;  %v3467_v62 = vld [vmem:[%s5162_s8] ss:$0 sm:$0xff] }
 0x331   : > { %3691 = vmatprep.subr.bf16.mxu1 %v4361_v3  ;;  %v1593_v6 = vrot.slane %v1579_v63, %v4783_v47  ;;  %v1609_v7 = vrot.slane %v1595_v0, %v4783_v47  ;;  %v1351_v13 = vcombine.high %v1325_v42, %v1333_v43  ;;  %v1367_v14 = vcombine.high %v1341_v44, %v1349_v45 }
 0x332   : > { %v1382_v59 = vcombine.low %v1358_v54, %v1374_v55  ;;  %v2034_v25 = vsel %vm1982_vm1, %v1683_v2, 0  ;;  %v1680_v8 = vcombine.low %v1661_v4, %v1677_v5  ;;  %v1383_v19 = vcombine.high %v1358_v54, %v1374_v55 }
 0x333   : > { %v1612_v20 = vcombine.low %v1593_v6, %v1609_v7  ;;  %v1283_v9 = vcombine.high %v4840_v15, %v4843_v16  ;;  %v1299_v10 = vcombine.high %v4846_v17, %v4849_v18  ;;  %v1315_v11 = vcombine.high %v1290_v51, %v1306_v52 }
 0x334   : > { %v1386_v1 = vpack.c.bf16 %v1382_v59, %v1314_v61  ;;  %v1365_v21 = vrot.slane %v1351_v13, %v4783_v47  ;;  %v1381_v22 = vrot.slane %v1367_v14, %v4783_v47  ;;  %v1681_v30 = vcombine.high %v1661_v4, %v1677_v5 }
 0x335   : > { %v1684_v12 = vpack.c.bf16 %v1680_v8, %v1612_v20  ;;  %v1387_v23 = vpack.c.bf16 %v1383_v19, %v1315_v11  ;;  %v1297_v24 = vrot.slane %v1283_v9, %v4783_v47  ;;  %v1313_v27 = vrot.slane %v1299_v10, %v4783_v47 }
 0x336   : > { %v1384_v15 = vcombine.low %v1365_v21, %v1381_v22  ;;  %v1613_v16 = vcombine.high %v1593_v6, %v1609_v7  ;;  %v1385_v33 = vcombine.high %v1365_v21, %v1381_v22  ;;  %v4918_v63 = vadd.f32 %v3467_v62, %v4775_v28 }
 0x337   : > { %3688 = vmatmul.mubr.msk.bf16.vlgmr.msra.gmra.mxu1 %vm1982_vm1, %v1386_v1  ;;  %v2081_v29 = vsel %vm1982_vm1, %v1684_v12, 0  ;;  %v1316_v17 = vcombine.low %v1297_v24, %v1313_v27  ;;  %v1317_v34 = vcombine.high %v1297_v24, %v1313_v27  ;;  %v4923_v0 = vadd.f32 %v3467_v62, %v4773_v26 }
 0x338   : > { %3692 = vmatpush3.bf16.xpose.msra.mxu1 %v2034_v25  ;;  %3693 = vmatprep.mubr.msk.bf16.mxu1 %vm4362_vm0, %v4361_v3  ;;  %v1685_v18 = vpack.c.bf16 %v1681_v30, %v1613_v16 }
 0x339   : > { %3697 = vmatprep.subr.bf16.mxu1 %v4361_v3  ;;  %v1388_v31 = vpack.c.bf16 %v1384_v15, %v1316_v17  ;;  %v1389_v35 = vpack.c.bf16 %v1385_v33, %v1317_v34 }
 0x33a   : > { %v2128_v32 = vsel %vm1982_vm1, %v1685_v18, 0 }
 0x33f   : > { %3694 = vmatmul.mubr.msk.bf16.vlgmr.msra.gmra.mxu1 %vm1982_vm1, %v1387_v23 }
 0x340   : > { %3698 = vmatpush3.bf16.xpose.msra.mxu1 %v2081_v29  ;;  %3699 = vmatprep.mubr.msk.bf16.mxu1 %vm4362_vm0, %v4361_v3 }
 0x341   : > { %3703 = vmatprep.subr.bf16.mxu1 %v4361_v3 }
 0x347   : > { %3700 = vmatmul.mubr.msk.bf16.vlgmr.msra.gmra.mxu1 %vm1982_vm1, %v1388_v31 }
 0x348   : > { %3704 = vmatpush3.bf16.xpose.msra.mxu1 %v2128_v32  ;;  %3705 = vmatprep.mubr.msk.bf16.mxu1 %vm4362_vm0, %v4361_v3 }
 0x349   : > { %3709 = vmatprep.subr.bf16.mxu1 %v4361_v3 }
 0x34f   : > { %3706 = vmatmul.mubr.msk.bf16.vlgmr.msra.gmra.mxu1 %vm1982_vm1, %v1389_v35 }
 0x350   : > { %3711 = vmatprep.mubr.msk.bf16.mxu1 %vm4362_vm0, %v4361_v3 }
 0x3f7   : > { %v2023_v37 = vpop.f32.mrf.mxu1 }
 0x3f8   : > { %v2172_v38 = vsel %vm2171_vm2, %v2023_v37, -inf }
 0x3f9   : > { %2173 = vmax.xlane.f32.xlu0 %v2172_v38  ;;  %v3689_v39 = vpop.f32.mrf.mxu1 }
 0x3fb   : > { %v2026_v41 = vpop.f32.mrf.mxu1 }
 0x3fc   : > { %v2175_v42 = vsel %vm2171_vm2, %v2026_v41, -inf }
 0x3fd   : > { %2176 = vmax.xlane.f32.xlu1 %v2175_v42  ;;  %v3690_v43 = vpop.f32.mrf.mxu1 }
 0x3ff   : > { %v2070_v44 = vpop.f32.mrf.mxu1 }
 0x400   : > { %v2178_v45 = vsel %vm2171_vm2, %v2070_v44, -inf }
 0x401   : > { %2179 = vmax.xlane.f32.xlu0 %v2178_v45  ;;  %v3695_v46 = vpop.f32.mrf.mxu1 }
 0x403   : > { %v2073_v48 = vpop.f32.mrf.mxu1 }
 0x404   : > { %v2181_v49 = vsel %vm2171_vm2, %v2073_v48, -inf }
 0x405   : > { %2182 = vmax.xlane.f32.xlu0 %v2181_v49  ;;  %v3696_v50 = vpop.f32.mrf.mxu1 }
 0x407   : > { %v2117_v51 = vpop.f32.mrf.mxu1 }
 0x408   : > { %v2184_v52 = vsel %vm2171_vm2, %v2117_v51, -inf }
 0x409   : > { %2185 = vmax.xlane.f32.xlu0 %v2184_v52  ;;  %v3701_v53 = vpop.f32.mrf.mxu1 }
 0x40b   : > { %v2120_v54 = vpop.f32.mrf.mxu1 }
 0x40c   : > { %v2187_v55 = vsel %vm2171_vm2, %v2120_v54, -inf }
 0x40d   : > { %2188 = vmax.xlane.f32.xlu1 %v2187_v55  ;;  %v3702_v56 = vpop.f32.mrf.mxu1 }
 0x40f   : > { %v2164_v57 = vpop.f32.mrf.mxu1 }
 0x410   : > { %v2190_v58 = vsel %vm2171_vm2, %v2164_v57, -inf }
 0x411   : > { %2191 = vmax.xlane.f32.xlu0 %v2190_v58  ;;  %v3707_v59 = vpop.f32.mrf.mxu1 }
 0x413   : > { %v2167_v60 = vpop.f32.mrf.mxu1 }
 0x414   : > { %v2193_v1 = vsel %vm2171_vm2, %v2167_v60, -inf }
 0x415   : > { %v3708_v61 = vpop.f32.mrf.mxu1 }
 0x41e   : > { %1690 = vrot.lane.b32.xlu1 %v4918_v63, %s4364_s1 }
 0x422   : > { %1694 = vrot.lane.b32.xlu1 %v4923_v0, %s4363_s16 }
 0x427   : > { %1688 = vrot.lane.b32.xlu0 %v4923_v0, %s4364_s1 }
 0x446   : > { %2194 = vmax.xlane.f32.xlu1 %v2193_v1 }
 0x457   : > { %1696 = vrot.lane.b32.xlu1 %v4918_v63, %s4363_s16 }
 0x482   : > { %v2174_v28 = vpop.xlane.xlu0 %2173 }
 0x483   : > { %v2196_v2 = vsub.f32 %v2023_v37, %v2174_v28 }
 0x485   : > { %v2204_v4 = vmul.f32 1.442695, %v2196_v2 }
 0x486   : > { %v2177_v5 = vpop.xlane.xlu1 %2176 }
 0x487   : > { %3995 = vpow2.f32 %v2204_v4  ;;  %v2197_v6 = vsub.f32 %v2026_v41, %v2177_v5 }
 0x489   : > { %v2206_v26 = vmul.f32 1.442695, %v2197_v6 }
 0x48a   : > { %v2180_v14 = vpop.xlane.xlu0 %2179 }
 0x48b   : > { %3997 = vpow2.f32 %v2206_v26  ;;  %v2198_v20 = vsub.f32 %v2070_v44, %v2180_v14 }
 0x48d   : > { %v2208_v11 = vmul.f32 1.442695, %v2198_v20 }
 0x48e   : > { %v2183_v19 = vpop.xlane.xlu0 %2182 }
 0x48f   : > { %v2199_v10 = vsub.f32 %v2073_v48, %v2183_v19  ;;  %3999 = vpow2.f32 %v2208_v11 }
 0x491   : > { %v2210_v22 = vmul.f32 1.442695, %v2199_v10 }
 0x492   : > { %v2186_v9 = vpop.xlane.xlu0 %2185 }
 0x493   : > { %v2200_v12 = vsub.f32 %v2117_v51, %v2186_v9  ;;  %4001 = vpow2.f32 %v2210_v22 }
 0x494   : > { %v4932_v7 = vpop.eup %3995 }
 0x495   : > { %v2220_v25 = vsel %vm2171_vm2, %v4932_v7, 0.0  ;;  %v2212_v23 = vmul.f32 1.442695, %v2200_v12 }
 0x496   : > { %2221 = vadd.xlane.f32.xlu0 %v2220_v25  ;;  %v2189_v21 = vpop.xlane.xlu1 %2188 }
 0x497   : > { %v2201_v24 = vsub.f32 %v2120_v54, %v2189_v21  ;;  %4003 = vpow2.f32 %v2212_v23 }
 0x498   : > { %v4936_v8 = vpop.eup %3997 }
 0x499   : > { %v2223_v13 = vsel %vm2171_vm2, %v4936_v8, 0.0  ;;  %v2214_v29 = vmul.f32 1.442695, %v2201_v24 }
 0x49a   : > { %2224 = vadd.xlane.f32.xlu1 %v2223_v13  ;;  %v2192_v27 = vpop.xlane.xlu0 %2191  ;;  %v1691_v16 = vpop.permute.xlu1 %1690 }
 0x49b   : > { %v2202_v30 = vsub.f32 %v2164_v57, %v2192_v27  ;;  %4005 = vpow2.f32 %v2214_v29 }
 0x49c   : > { %v4944_v17 = vpop.eup %3999 }
 0x49d   : > { %v2216_v15 = vmul.f32 1.442695, %v2202_v30  ;;  %v2226_v31 = vsel %vm2171_vm2, %v4944_v17, 0.0 }
 0x49e   : > { %v1695_v33 = vpop.permute.xlu1 %1694  ;;  %v1689_v48 = vpop.permute.xlu0 %1688 }
 0x49f   : > { %4007 = vpow2.f32 %v2216_v15  ;;  %v1706_v51 = vcombine.low %v4923_v0, %v1695_v33  ;;  %v1707_v52 = vcombine.high %v4923_v0, %v1695_v33 }
 0x4a0   : > { %v4946_v18 = vpop.eup %4001 }
 0x4a1   : > { %v2229_v35 = vsel %vm2171_vm2, %v4946_v18, 0.0  ;;  %v1714_v58 = vrot.slane %v1706_v51, %v4780_v40  ;;  %v1721_v59 = vrot.slane %v1707_v52, %v4780_v40 }
 0x4a4   : > { %v4950_v32 = vpop.eup %4003 }
 0x4a5   : > { %v2232_v34 = vsel %vm2171_vm2, %v4950_v32, 0.0 }
 0x4a8   : > { %v4956_v37 = vpop.eup %4005 }
 0x4a9   : > { %v2235_v42 = vsel %vm2171_vm2, %v4956_v37, 0.0 }
 0x4ab   : > { %1702 = vrot.lane.b32.xlu1 %v4918_v63, %s4365_s17 }
 0x4ac   : > { %1700 = vrot.lane.b32.xlu0 %v4923_v0, %s4365_s17  ;;  %v4960_v43 = vpop.eup %4007 }
 0x4ad   : > { %v2238_v44 = vsel %vm2171_vm2, %v4960_v43, 0.0 }
 0x4cb   : > { %2227 = vadd.xlane.f32.xlu0 %v2226_v31 }
 0x4cf   : > { %2233 = vadd.xlane.f32.xlu0 %v2232_v34  ;;  %2230 = vadd.xlane.f32.xlu1 %v2229_v35  ;;  %v2195_v38 = vpop.xlane.xlu1 %2194 }
 0x4d0   : > { %v2203_v39 = vsub.f32 %v2167_v60, %v2195_v38 }
 0x4d2   : > { %v2218_v41 = vmul.f32 1.442695, %v2203_v39 }
 0x4d3   : > { %2236 = vadd.xlane.f32.xlu0 %v2235_v42  ;;  %v1697_v49 = vpop.permute.xlu1 %1696 }
 0x4d4   : > { %4009 = vpow2.f32 %v2218_v41  ;;  %v1774_v57 = vcombine.low %v4918_v63, %v1697_v49  ;;  %v1775_v62 = vcombine.high %v4918_v63, %v1697_v49 }
 0x4d6   : > { %v1782_v5 = vrot.slane %v1774_v57, %v4780_v40  ;;  %v1789_v63 = vrot.slane %v1775_v62, %v4780_v40 }
 0x4d7   : > { %2239 = vadd.xlane.f32.xlu0 %v2238_v44 }
 0x4e1   : > { %v4964_v45 = vpop.eup %4009 }
 0x4e2   : > { %v2241_v46 = vsel %vm2171_vm2, %v4964_v45, 0.0 }
 0x4e3   : > { %2242 = vadd.xlane.f32.xlu1 %v2241_v46 }
 0x51f   : > { %v2222_v50 = vpop.xlane.xlu0 %2221 }
 0x523   : > { %v1701_v53 = vpop.permute.xlu0 %1700  ;;  %v2225_v54 = vpop.xlane.xlu1 %2224 }
 0x524   : > { %v1722_v55 = vcombine.low %v1689_v48, %v1701_v53  ;;  %v1723_v56 = vcombine.high %v1689_v48, %v1701_v53  ;;  %4011 = vrcp.f32 %v2225_v54 }
 0x525   : > { %4013 = vrcp.f32 %v2222_v50 }
 0x526   : > { %v1730_v60 = vrot.slane %v1722_v55, %v4780_v40  ;;  %v1737_v61 = vrot.slane %v1723_v56, %v4780_v40 }
 0x527   : > { %v1703_v1 = vpop.permute.xlu1 %1702 }
 0x528   : > { %v1738_v28 = vcombine.low %v1714_v58, %v1730_v60  ;;  %v1739_v2 = vcombine.high %v1714_v58, %v1730_v60  ;;  %v1754_v0 = vcombine.low %v1721_v59, %v1737_v61  ;;  %v1755_v4 = vcombine.high %v1721_v59, %v1737_v61 }
 0x529   : > { %v1790_v6 = vcombine.low %v1691_v16, %v1703_v1  ;;  %v1791_v26 = vcombine.high %v1691_v16, %v1703_v1 }
 0x52a   : > { %v1746_v25 = vrot.slane %v1738_v28, %v4783_v47  ;;  %v1753_v13 = vrot.slane %v1739_v2, %v4783_v47  ;;  %v1762_v14 = vrot.slane %v1754_v0, %v4783_v47  ;;  %v1769_v19 = vrot.slane %v1755_v4, %v4783_v47 }
 0x52b   : > { %v1798_v20 = vrot.slane %v1790_v6, %v4780_v40  ;;  %v1805_v9 = vrot.slane %v1791_v26, %v4780_v40 }
 0x52c   : > { %v1842_v10 = vcombine.low %v1746_v25, %v1753_v13  ;;  %v3484_v11 = vcombine.high %v1746_v25, %v1753_v13  ;;  %v1858_v12 = vcombine.low %v1762_v14, %v1769_v19  ;;  %v3485_v21 = vcombine.high %v1762_v14, %v1769_v19 }
 0x52d   : > { %v1806_v22 = vcombine.low %v1782_v5, %v1798_v20  ;;  %v1807_v23 = vcombine.high %v1782_v5, %v1798_v20  ;;  %v1822_v24 = vcombine.low %v1789_v63, %v1805_v9  ;;  %v1823_v27 = vcombine.high %v1789_v63, %v1805_v9 }
 0x52e   : > { %v1849_v29 = vrot.slane %v1842_v10, %v4780_v40  ;;  %v1857_v30 = vrot.slane %v3484_v11, %v4780_v40  ;;  %v1865_v15 = vrot.slane %v1858_v12, %v4780_v40  ;;  %v1873_v16 = vrot.slane %v3485_v21, %v4780_v40 }
 0x52f   : > { %v1814_v31 = vrot.slane %v1806_v22, %v4783_v47  ;;  %v1821_v33 = vrot.slane %v1807_v23, %v4783_v47  ;;  %v1830_v34 = vrot.slane %v1822_v24, %v4783_v47  ;;  %v1837_v35 = vrot.slane %v1823_v27, %v4783_v47 }
 0x530   : > { %v1874_v38 = vcombine.low %v1849_v29, %v1857_v30  ;;  %v1890_v39 = vcombine.low %v1865_v15, %v1873_v16  ;;  %v1875_v14 = vcombine.high %v1849_v29, %v1857_v30  ;;  %v1891_v19 = vcombine.high %v1865_v15, %v1873_v16 }
 0x531   : > { %v1910_v41 = vcombine.low %v1814_v31, %v1821_v33  ;;  %v3486_v42 = vcombine.high %v1814_v31, %v1821_v33  ;;  %v1926_v44 = vcombine.low %v1830_v34, %v1837_v35  ;;  %v3487_v46 = vcombine.high %v1830_v34, %v1837_v35  ;;  %v4012_v56 = vpop.eup %4011 }
 0x532   : > { %v1882_v52 = vrot.slane %v1874_v38, %v4783_v47  ;;  %v1898_v53 = vrot.slane %v1890_v39, %v4783_v47  ;;  %v4014_v59 = vpop.eup %4013  ;;  %v2253_v62 = vmul.f32 %v4012_v56, %v4936_v8  ;;  %v1889_v10 = vrot.slane %v1875_v14, %v4783_v47 }
 0x533   : > { %v1917_v48 = vrot.slane %v1910_v41, %v4780_v40  ;;  %v1925_v49 = vrot.slane %v3486_v42, %v4780_v40  ;;  %v1933_v50 = vrot.slane %v1926_v44, %v4780_v40  ;;  %v1941_v51 = vrot.slane %v3487_v46, %v4780_v40 }
 0x534   : > { %v1906_v60 = vcombine.low %v1882_v52, %v1898_v53  ;;  %v2252_v2 = vmul.f32 %v4014_v59, %v4932_v7  ;;  %v1907_v0 = vcombine.high %v1882_v52, %v1898_v53  ;;  %v1905_v11 = vrot.slane %v1891_v19, %v4783_v47 }
 0x535   : > { %v1942_v54 = vcombine.low %v1917_v48, %v1925_v49  ;;  %v1958_v55 = vcombine.low %v1933_v50, %v1941_v51  ;;  %v1943_v25 = vcombine.high %v1917_v48, %v1925_v49  ;;  %v1959_v13 = vcombine.high %v1933_v50, %v1941_v51  ;;  %v3941_v48 = vld [vmem:[#allocation11 + $0x28] sm:$0xff]   ;;  %v3942_v49 = vld [vmem:[#allocation11 + $0x20] sm:$0xff]  }
 0x536   : > { %v2260_v4 = vpack.c.bf16 %v2253_v62, %v2252_v2  ;;  %v1908_v27 = vcombine.low %v1889_v10, %v1905_v11  ;;  %v1909_v34 = vcombine.high %v1889_v10, %v1905_v11 }
 0x537   : > { %v1950_v57 = vrot.slane %v1942_v54, %v4783_v47  ;;  %v1966_v58 = vrot.slane %v1958_v55, %v4783_v47  ;;  %v1957_v63 = vrot.slane %v1943_v25, %v4783_v47  ;;  %v1973_v20 = vrot.slane %v1959_v13, %v4783_v47 }
 0x539   : > { %v1974_v61 = vcombine.low %v1950_v57, %v1966_v58  ;;  %v1975_v28 = vcombine.high %v1950_v57, %v1966_v58  ;;  %v1976_v21 = vcombine.low %v1957_v63, %v1973_v20  ;;  %v1977_v33 = vcombine.high %v1957_v63, %v1973_v20 }
 0x53b   : > { %v1978_v1 = vpack.c.bf16 %v1974_v61, %v1906_v60  ;;  %v1979_v5 = vpack.c.bf16 %v1975_v28, %v1907_v0  ;;  %v1980_v30 = vpack.c.bf16 %v1976_v21, %v1908_v27  ;;  %v1981_v38 = vpack.c.bf16 %v1977_v33, %v1909_v34 }
 0x53d   : > { %3710 = vmatpush3.bf16.msra.mxu1 %v1978_v1 }
 0x53e   : > { %3715 = vmatprep.subr.bf16.mxu1 %v4361_v3 }
 0x540   : > { %3712 = vmatmul.mubr.msk.bf16.vlgmr.msra.gmra.mxu1 %vm2171_vm2, %v2260_v4 }
 0x541   : > { %3716 = vmatpush3.bf16.msra.mxu1 %v1979_v5  ;;  %3717 = vmatprep.mubr.msk.bf16.mxu1 %vm4362_vm0, %v4361_v3 }
 0x542   : > { %3721 = vmatprep.subr.bf16.mxu1 %v4361_v3 }
 0x554   : > { %v2228_v6 = vpop.xlane.xlu0 %2227 }
 0x555   : > { %4015 = vrcp.f32 %v2228_v6 }
 0x558   : > { %v2234_v8 = vpop.xlane.xlu0 %2233  ;;  %v2231_v26 = vpop.xlane.xlu1 %2230 }
 0x559   : > { %4017 = vrcp.f32 %v2231_v26 }
 0x55c   : > { %v2237_v7 = vpop.xlane.xlu0 %2236 }
 0x55d   : > { %4019 = vrcp.f32 %v2237_v7 }
 0x55e   : > { %4021 = vrcp.f32 %v2234_v8 }
 0x560   : > { %v2240_v22 = vpop.xlane.xlu0 %2239 }
 0x561   : > { %4023 = vrcp.f32 %v2240_v22 }
 0x562   : > { %v4016_v9 = vpop.eup %4015 }
 0x563   : > { %v2254_v23 = vmul.f32 %v4016_v9, %v4944_v17 }
 0x566   : > { %v4018_v12 = vpop.eup %4017 }
 0x567   : > { %v2255_v24 = vmul.f32 %v4018_v12, %v4946_v18 }
 0x569   : > { %v2261_v31 = vpack.c.bf16 %v2255_v24, %v2254_v23 }
 0x56a   : > { %v4020_v29 = vpop.eup %4019 }
 0x56b   : > { %3718 = vmatmul.mubr.msk.bf16.vlgmr.msra.gmra.mxu1 %vm2171_vm2, %v2261_v31  ;;  %v4022_v16 = vpop.eup %4021  ;;  %v2257_v17 = vmul.f32 %v4020_v29, %v4956_v37  ;;  %v3939_v37 = vld [vmem:[#allocation11 + $0x38] sm:$0xff]  }
 0x56c   : > { %v2243_v15 = vpop.xlane.xlu1 %2242  ;;  %3722 = vmatpush3.bf16.msra.mxu1 %v1980_v30  ;;  %3723 = vmatprep.mubr.msk.bf16.mxu1 %vm4362_vm0, %v4361_v3  ;;  %v2256_v18 = vmul.f32 %v4022_v16, %v4950_v32  ;;  %v3940_v32 = vld [vmem:[#allocation11 + $0x30] sm:$0xff]  }
 0x56d   : > { %4025 = vrcp.f32 %v2243_v15  ;;  %3727 = vmatprep.subr.bf16.mxu1 %v4361_v3  ;;  %3734 = vmatpush3.bf16.msra.mxu0 %v3939_v37 }
 0x56e   : > { %v2262_v35 = vpack.c.bf16 %v2257_v17, %v2256_v18  ;;  %v4024_v39 = vpop.eup %4023  ;;  %3735 = vmatprep.subr.bf16.mxu0 %v4361_v3 }
 0x56f   : > { %v2258_v42 = vmul.f32 %v4024_v39, %v4960_v43  ;;  %v3943_v43 = vld [vmem:[#allocation11 + $0x18] sm:$0xff]  }
 0x571   : > { %3736 = vmatpush3.bf16.msra.mxu0 %v3940_v32 }
 0x572   : > { %3737 = vmatprep.subr.bf16.mxu0 %v4361_v3 }
 0x573   : > { %3724 = vmatmul.mubr.msk.bf16.vlgmr.msra.gmra.mxu1 %vm2171_vm2, %v2262_v35 }
 0x574   : > { %3728 = vmatpush3.bf16.msra.mxu1 %v1981_v38  ;;  %3729 = vmatprep.mubr.msk.bf16.mxu1 %vm4362_vm0, %v4361_v3 }
 0x575   : > { %3738 = vmatpush3.bf16.msra.mxu0 %v3941_v48 }
 0x576   : > { %3739 = vmatprep.subr.bf16.mxu0 %v4361_v3 }
 0x579   : > { %3740 = vmatpush3.bf16.msra.mxu0 %v3942_v49 }
 0x57a   : > { %v4026_v41 = vpop.eup %4025  ;;  %3741 = vmatprep.subr.bf16.mxu0 %v4361_v3 }
 0x57b   : > { %v2259_v44 = vmul.f32 %v4026_v41, %v4964_v45  ;;  %v3944_v45 = vld [vmem:[#allocation11 + $0x10] sm:$0xff]  }
 0x57d   : > { %v2263_v46 = vpack.c.bf16 %v2259_v44, %v2258_v42  ;;  %3742 = vmatpush3.bf16.msra.mxu0 %v3943_v43 }
 0x57e   : > { %3743 = vmatprep.subr.bf16.mxu0 %v4361_v3 }
 0x57f   : > { %3730 = vmatmul.mubr.msk.bf16.vlgmr.msra.gmra.mxu1 %vm2171_vm2, %v2263_v46 }
 0x581   : > { %3744 = vmatpush3.bf16.msra.mxu0 %v3944_v45 }
 0x582   : > { %3745 = vmatprep.subr.bf16.mxu0 %v4361_v3 }
 0x600   : > { %v2301_v50 = vpop.f32.mrf.mxu1 }
 0x602   : > { %v3713_v51 = vpop.f32.mrf.mxu1 }
 0x604   : > { %v2304_v52 = vpop.f32.mrf.mxu1 }
 0x606   : > { %v3714_v53 = vpop.f32.mrf.mxu1 }
 0x62b   : > { %v2345_v54 = vpop.f32.mrf.mxu1 }
 0x62d   : > { %v3719_v55 = vpop.f32.mrf.mxu1 }
 0x62f   : > { %v2348_v56 = vpop.f32.mrf.mxu1 }
 0x631   : > { %v3720_v57 = vpop.f32.mrf.mxu1 }
 0x633   : > { %v2389_v58 = vpop.f32.mrf.mxu1 }
 0x634   : > { %v2440_v62 = vcombine.low %v2301_v50, %v2389_v58  ;;  %v2441_v1 = vcombine.high %v2301_v50, %v2389_v58 }
 0x635   : > { %v3725_v59 = vpop.f32.mrf.mxu1 }
 0x636   : > { %v2448_v5 = vrot.slane %v2440_v62, %v4780_v40  ;;  %v2455_v6 = vrot.slane %v2441_v1, %v4780_v40 }
 0x637   : > { %v2392_v60 = vpop.f32.mrf.mxu1 }
 0x638   : > { %v2508_v7 = vcombine.low %v2304_v52, %v2392_v60  ;;  %v2509_v25 = vcombine.high %v2304_v52, %v2392_v60 }
 0x639   : > { %v3726_v61 = vpop.f32.mrf.mxu1 }
 0x63a   : > { %v2516_v24 = vrot.slane %v2508_v7, %v4780_v40  ;;  %v2523_v27 = vrot.slane %v2509_v25, %v4780_v40 }
 0x63f   : > { %v2433_v28 = vpop.f32.mrf.mxu1 }
 0x640   : > { %v2456_v2 = vcombine.low %v2345_v54, %v2433_v28  ;;  %v2457_v0 = vcombine.high %v2345_v54, %v2433_v28 }
 0x641   : > { %v3731_v4 = vpop.f32.mrf.mxu1 }
 0x642   : > { %v2464_v8 = vrot.slane %v2456_v2, %v4780_v40  ;;  %v2471_v26 = vrot.slane %v2457_v0, %v4780_v40 }
 0x643   : > { %v2436_v13 = vpop.f32.mrf.mxu1 }
 0x644   : > { %v2472_v14 = vcombine.low %v2448_v5, %v2464_v8  ;;  %v2473_v19 = vcombine.high %v2448_v5, %v2464_v8  ;;  %v2488_v63 = vcombine.low %v2455_v6, %v2471_v26  ;;  %v2489_v20 = vcombine.high %v2455_v6, %v2471_v26  ;;  %v3946_v26 = vld [vmem:[#allocation11] sm:$0xff]  }
 0x645   : > { %v2524_v9 = vcombine.low %v2348_v56, %v2436_v13  ;;  %v2525_v10 = vcombine.high %v2348_v56, %v2436_v13  ;;  %v3732_v11 = vpop.f32.mrf.mxu1  ;;  %v3945_v56 = vld [vmem:[#allocation11 + $0x8] sm:$0xff]  }
 0x646   : > { %v2480_v12 = vrot.slane %v2472_v14, %v4783_v47  ;;  %v2487_v21 = vrot.slane %v2473_v19, %v4783_v47  ;;  %v2496_v22 = vrot.slane %v2488_v63, %v4783_v47  ;;  %v2503_v23 = vrot.slane %v2489_v20, %v4783_v47  ;;  %3746 = vmatpush3.bf16.msra.mxu0 %v3945_v56 }
 0x647   : > { %v2532_v31 = vrot.slane %v2524_v9, %v4780_v40  ;;  %v2539_v29 = vrot.slane %v2525_v10, %v4780_v40  ;;  %3747 = vmatprep.subr.bf16.mxu0 %v4361_v3 }
 0x648   : > { %v2576_v30 = vcombine.low %v2480_v12, %v2487_v21  ;;  %v3496_v15 = vcombine.high %v2480_v12, %v2487_v21  ;;  %v2592_v16 = vcombine.low %v2496_v22, %v2503_v23  ;;  %v3497_v17 = vcombine.high %v2496_v22, %v2503_v23 }
 0x649   : > { %v2540_v33 = vcombine.low %v2516_v24, %v2532_v31  ;;  %v2541_v18 = vcombine.high %v2516_v24, %v2532_v31  ;;  %v2556_v34 = vcombine.low %v2523_v27, %v2539_v29  ;;  %v2557_v35 = vcombine.high %v2523_v27, %v2539_v29 }
 0x64a   : > { %v2583_v38 = vrot.slane %v2576_v30, %v4780_v40  ;;  %v2591_v39 = vrot.slane %v3496_v15, %v4780_v40  ;;  %v2599_v41 = vrot.slane %v2592_v16, %v4780_v40  ;;  %v2607_v42 = vrot.slane %v3497_v17, %v4780_v40  ;;  %3748 = vmatpush3.bf16.msra.mxu0 %v3946_v26 }
 0x64b   : > { %v2548_v44 = vrot.slane %v2540_v33, %v4783_v47  ;;  %v2555_v46 = vrot.slane %v2541_v18, %v4783_v47  ;;  %v2564_v37 = vrot.slane %v2556_v34, %v4783_v47  ;;  %v2571_v32 = vrot.slane %v2557_v35, %v4783_v47  ;;  %v3500_v34 = vld [vmem:[%s5164_s10] ss:$0 sm:$0xff] }
 0x64c   : > { %v2609_v48 = vcombine.high %v2583_v38, %v2591_v39  ;;  %v2625_v49 = vcombine.high %v2599_v41, %v2607_v42  ;;  %v2608_v43 = vcombine.low %v2583_v38, %v2591_v39  ;;  %v2624_v45 = vcombine.low %v2599_v41, %v2607_v42  ;;  %v4039_v41 = vld [vmem:[%s4657_s0] sm:$0xff] }
 0x64d   : > { %v2644_v50 = vcombine.low %v2548_v44, %v2555_v46  ;;  %v3498_v51 = vcombine.high %v2548_v44, %v2555_v46  ;;  %v2660_v52 = vcombine.low %v2564_v37, %v2571_v32  ;;  %v3499_v53 = vcombine.high %v2564_v37, %v2571_v32  ;;  %v4040_v32 = vld [vmem:[%s4657_s0 + $0x8] sm:$0xff]  ;;  %s5219_s0 = smov %s5218_s28 }
 0x64e   : > { %v2616_v54 = vrot.slane %v2608_v43, %v4783_v47  ;;  %v2632_v55 = vrot.slane %v2624_v45, %v4783_v47  ;;  %v2623_v61 = vrot.slane %v2609_v48, %v4783_v47  ;;  %v2639_v62 = vrot.slane %v2625_v49, %v4783_v47  ;;  %v3947_v49 = vld [vmem:[#allocation13 + $0x70] ss:$8 sps:$4 sm:$0xff]   ;;  %v3949_v43 = vld [vmem:[#allocation13 + $0x74] ss:$8 sps:$4 sm:$0xff]  }
 0x64f   : > { %v2651_v57 = vrot.slane %v2644_v50, %v4780_v40  ;;  %v2659_v58 = vrot.slane %v3498_v51, %v4780_v40  ;;  %v2667_v59 = vrot.slane %v2660_v52, %v4780_v40  ;;  %v2675_v60 = vrot.slane %v3499_v53, %v4780_v40  ;;  %3008 = vmatprep.subr.bf16.mxu1 %v3949_v43 }
 0x650   : > { %v2640_v1 = vcombine.low %v2616_v54, %v2632_v55  ;;  %v2642_v7 = vcombine.low %v2623_v61, %v2639_v62  ;;  %v2641_v25 = vcombine.high %v2616_v54, %v2632_v55  ;;  %v2643_v13 = vcombine.high %v2623_v61, %v2639_v62  ;;  %3009 = vmatpush1.bf16.msra.mxu1 %v3947_v49  ;;  %v3958_v61 = vld [vmem:[#allocation13 + $0x44] ss:$8 sps:$4 sm:$0xff]   ;;  %v3956_v62 = vld [vmem:[#allocation13 + $0x40] ss:$8 sps:$4 sm:$0xff]  }
 0x651   : > { %v2677_v28 = vcombine.high %v2651_v57, %v2659_v58  ;;  %v2693_v2 = vcombine.high %v2667_v59, %v2675_v60  ;;  %v2676_v0 = vcombine.low %v2651_v57, %v2659_v58  ;;  %v2692_v4 = vcombine.low %v2667_v59, %v2675_v60  ;;  %v3950_v57 = vld [vmem:[#allocation13 + $0x60] ss:$8 sps:$4 sm:$0xff]   ;;  %v3952_v58 = vld [vmem:[#allocation13 + $0x64] ss:$8 sps:$4 sm:$0xff]   ;;  %v3953_v59 = vld [vmem:[#allocation13 + $0x50] ss:$8 sps:$4 sm:$0xff]  }
 0x652   : > { %3010 = vmatprep.subr.bf16.mxu1 %v3952_v58  ;;  %v3955_v60 = vld [vmem:[#allocation13 + $0x54] ss:$8 sps:$4 sm:$0xff]  }
 0x653   : > { %v2691_v5 = vrot.slane %v2677_v28, %v4783_v47  ;;  %v2707_v6 = vrot.slane %v2693_v2, %v4783_v47  ;;  %v2684_v8 = vrot.slane %v2676_v0, %v4783_v47  ;;  %v2700_v40 = vrot.slane %v2692_v4, %v4783_v47  ;;  %v3959_v2 = vld [vmem:[#allocation13 + $0x30] ss:$8 sps:$4 sm:$0xff]   ;;  %v3964_v0 = vld [vmem:[#allocation13 + $0x24] ss:$8 sps:$4 sm:$0xff]   ;;  %v3962_v4 = vld [vmem:[#allocation13 + $0x20] ss:$8 sps:$4 sm:$0xff]  }
 0x654   : > { %3011 = vmatpush1.bf16.msra.mxu1 %v3950_v57  ;;  %v4368_v28 = vmov 0  }
 0x655   : > { %v2710_v14 = vcombine.low %v2691_v5, %v2707_v6  ;;  %v2709_v19 = vcombine.high %v2684_v8, %v2700_v40  ;;  %v2708_v63 = vcombine.low %v2684_v8, %v2700_v40  ;;  %v2711_v20 = vcombine.high %v2691_v5, %v2707_v6  ;;  %3012 = vmatprep.subr.bf16.mxu1 %v3955_v60  ;;  %v3967_v5 = vld [vmem:[#allocation13 + $0x14] ss:$8 sps:$4 sm:$0xff]   ;;  %v3965_v6 = vld [vmem:[#allocation13 + $0x10] ss:$8 sps:$4 sm:$0xff]   ;;  %v3970_v8 = vld [vmem:[#allocation13 + $0x4] ss:$8 sps:$4 sm:$0xff]  }
 0x656   : > { %3040 = vmatprep.mubr.bf16.mxu1 %v4368_v28  ;;  %v3968_v40 = vld [vmem:[#allocation13] ss:$8 sps:$4 sm:$0xff]  }
 0x657   : > { %v3905_v9 = vpack.i.bf16 %v2710_v14, %v2642_v7  ;;  %v3900_v10 = vpack.i.bf16 %v2709_v19, %v2641_v25  ;;  %v3910_v3 = vpack.i.bf16 %v2711_v20, %v2643_v13 }
 0x658   : > { %3013 = vmatpush1.bf16.msra.mxu1 %v3953_v59 }
 0x659   : > { %3906 = vrot.lane.b32.xlu1 %v3905_v9, %s4363_s16  ;;  %3901 = vrot.lane.b32.xlu0 %v3900_v10, %s4365_s17  ;;  %v3509_v9 = vld [vmem:[%s5165_s11] ss:$0 sm:$0xff]  ;;  %s5216_s16 = sld [smem:[#allocation23_spill]]  ;;  %s680_s17 = scalar_lea.vmem [#allocation16], %s3438_s15 }
 0x65a   : > { %3014 = vmatprep.subr.bf16.mxu1 %v3958_v61  ;;  %s3270_s4 = sshll.u32 %s680_s17, 4  ;;  %s3255_s15 = scalar_lea.sflag [#allocation4], %s4651_s2  ;;  %s5100_s4 = int_to_ptr.vmem [resolvable:$true] %s3270_s4 }
 0x65b   : > { %s4251_s30 = scalar_lea.vmem %s5100_s4, 256  ;;  %p4258_p6 = scmp.lt.s32.totalorder %s5100_s4, %s4256_s20 }
 0x65c   : > { %3015 = vmatpush1.bf16.msra.mxu1 %v3956_v62  ;;  %p4252_p1 = scmp.ne.s32.totalorder %s5100_s4, %s4251_s30 }
 0x65d   : > { %3911 = vrot.lane.b32.xlu1 %v3910_v3, %s4364_s1 }
 0x65e   : > { %p4253_p4 = pnand %p4252_p1, %p5220_p3 }
 0x65f   : > { %s3550_s3 = sshll.u32 %s5216_s16, 8 }
 0x660   : > { %s5105_s13 = scalar_lea.hbm %s5218_s28, %s3550_s3  ;;  %p4254_p2 = pneg %p4253_p4 }
 0x6cb   : > { %v3907_v11 = vpop.permute.xlu1 %3906  ;;  %v3902_v47 = vpop.permute.xlu0 %3901 }
 0x6cc   : > { %v3904_v12 = vunpack.i.h.bf16 %v3902_v47  ;;  %v3903_v21 = vunpack.i.l.bf16 %v3902_v47  ;;  %v3909_v22 = vunpack.i.h.bf16 %v3907_v11  ;;  %v3908_v23 = vunpack.i.l.bf16 %v3907_v11  ;;  %v3510_v47 = vld [vmem:[%s5166_s12] ss:$0 sm:$0xff] }
 0x6ce   : > { %v2736_v24 = vsel %vm1982_vm1, %v2640_v1, %v3903_v21  ;;  %v2737_v27 = vsel %vm1982_vm1, %v2708_v63, %v3904_v12  ;;  %v3961_v1 = vld [vmem:[#allocation13 + $0x34] ss:$8 sps:$4 sm:$0xff]  }
 0x6cf   : > { %v3912_v31 = vpop.permute.xlu1 %3911  ;;  %v2739_v15 = vsel %vm2738_vm3, %v2736_v24, %v3908_v23  ;;  %v2740_v16 = vsel %vm2738_vm3, %v2737_v27, %v3909_v22  ;;  %3016 = vmatprep.subr.bf16.mxu1 %v3961_v1  ;;  %v3971_v24 = vld [vmem:[#allocation14 + $0x78] sm:$0xff]  }
 0x6d0   : > { %v3914_v29 = vunpack.i.h.bf16 %v3912_v31  ;;  %v3913_v30 = vunpack.i.l.bf16 %v3912_v31  ;;  %3017 = vmatpush1.bf16.msra.mxu1 %v3959_v2  ;;  %v3972_v27 = vld [vmem:[#allocation14 + $0x38] sm:$0xff]   ;;  %3603 = vmatprep.subr.bf16.mxu0 %v3971_v24  ;;  %v3973_v31 = vld [vmem:[#allocation14 + $0x70] sm:$0xff]  }
 0x6d1   : > { %3018 = vmatprep.subr.bf16.mxu1 %v3964_v0 }
 0x6d2   : > { %v2742_v17 = vsel %vm2741_vm4, %v2739_v15, %v3913_v30  ;;  %v2743_v33 = vsel %vm2741_vm4, %v2740_v16, %v3914_v29  ;;  %v3974_v29 = vld [vmem:[#allocation14 + $0x30] sm:$0xff]   ;;  %v3975_v30 = vld [vmem:[#allocation14 + $0x68] sm:$0xff]   ;;  %v3977_v16 = vld [vmem:[#allocation14 + $0x60] sm:$0xff]  }
 0x6d3   : > { %v2744_v18 = vpack.c.bf16 %v2743_v33, %v2742_v17  ;;  %v3976_v15 = vld [vmem:[#allocation14 + $0x28] sm:$0xff]   ;;  %v3978_v17 = vld [vmem:[#allocation14 + $0x20] sm:$0xff]   ;;  %v3979_v33 = vld [vmem:[#allocation14 + $0x58] sm:$0xff]  }
 0x6d4   : > { %3019 = vmatpush1.bf16.msra.mxu1 %v3962_v4 }
 0x6d5   : > { %3750 = vmatmul.mubr.bf16.vlgmr.msra.gmra.mxu0 %v2744_v18  ;;  %3020 = vmatprep.subr.bf16.mxu1 %v3967_v5  ;;  %v3980_v18 = vld [vmem:[#allocation14 + $0x18] sm:$0xff]  }
 0x6d6   : > { %3604 = vmatpush3.bf16.msra.mxu0 %v3972_v27 }
 0x6d7   : > { %3605 = vmatprep.subr.bf16.mxu0 %v3973_v31 }
 0x6d8   : > { %3021 = vmatpush1.bf16.msra.mxu1 %v3965_v6 }
 0x6d9   : > { %3022 = vmatprep.subr.bf16.mxu1 %v3970_v8 }
 0x6da   : > { %3606 = vmatpush3.bf16.msra.mxu0 %v3974_v29 }
 0x6db   : > { %3607 = vmatprep.subr.bf16.mxu0 %v3975_v30 }
 0x6dc   : > { %3023 = vmatpush1.bf16.msra.mxu1 %v3968_v40 }
 0x6de   : > { %3608 = vmatpush3.bf16.msra.mxu0 %v3976_v15 }
 0x6df   : > { %3609 = vmatprep.subr.bf16.mxu0 %v3977_v16 }
 0x6e2   : > { %3610 = vmatpush3.bf16.msra.mxu0 %v3978_v17 }
 0x6e3   : > { %3611 = vmatprep.subr.bf16.mxu0 %v3979_v33 }
 0x6e6   : > { %3612 = vmatpush3.bf16.msra.mxu0 %v3980_v18 }
 0x795   : > { %v2850_v35 = vpop.f32.mrf.mxu0 }
 0x796   : > { %v2851_v38 = vadd.f32 %v3500_v34, %v2850_v35  ;;  %v3982_v35 = vld [vmem:[#allocation14 + $0x10] sm:$0xff]  }
 0x797   : > { %v3751_v39 = vpop.f32.mrf.mxu0 }
 0x798   : > { %v5073_v42 = vadd.f32 %v4039_v41, %v2851_v38  ;;  %v3983_v38 = vld [vmem:[#allocation14 + $0x48] sm:$0xff]   ;;  %v3985_v41 = vld [vmem:[#allocation14 + $0x40] sm:$0xff]  }
 0x799   : > { %v2853_v44 = vpop.f32.mrf.mxu0  ;;  %v3984_v39 = vld [vmem:[#allocation14 + $0x8] sm:$0xff]  }
 0x79a   : > { %v2854_v46 = vadd.f32 %v3500_v34, %v2853_v44  ;;  %2861 = vadd.xlane.f32.xlu1 %v5073_v42  ;;  %v3981_v34 = vld [vmem:[#allocation14 + $0x50] sm:$0xff]   ;;  %v3986_v44 = vld [vmem:[#allocation14] sm:$0xff]  }
 0x79b   : > { %v3752_v37 = vpop.f32.mrf.mxu0  ;;  %3613 = vmatprep.subr.bf16.mxu0 %v3981_v34 }
 0x79c   : > { %v5077_v48 = vadd.f32 %v4040_v32, %v2854_v46  ;;  %3614 = vmatpush3.bf16.msra.mxu0 %v3982_v35  ;;  %v2920_v46 = vsub.s32 0, %v4777_v36  ;;  %v2916_v37 = vld [vmem:[%s5215_s23] sm:$0x3]  ;;  %v2924_v32 = vsub.s32 1, %v4777_v36  ;;  %s4257_s23 = scalar_lea.vmem %s4256_s20, 512 }
 0x79d   : > { %3615 = vmatprep.subr.bf16.mxu0 %v3983_v38  ;;  %p4259_p11 = scmp.lt.s32.totalorder %s4257_s23, %s4251_s30 }
 0x79e   : > { %2863 = vadd.xlane.f32.xlu0 %v5077_v48  ;;  %v2921_v49 = vrot.slane %v2916_v37, %v2920_v46  ;;  %v2925_v43 = vrot.slane %v2916_v37, %v2924_v32 }
 0x79f   : > { %p4260_p10 = por %p4259_p11, %p4258_p6 }
 0x7a0   : > { %3616 = vmatpush3.bf16.msra.mxu0 %v3984_v39 }
 0x7a1   : > { %3617 = vmatprep.subr.bf16.mxu0 %v3985_v41  ;;  %p4261_p7 = pnand %p4260_p10, %p4254_p2 }
 0x7a4   : > { %3618 = vmatpush3.bf16.msra.mxu0 %v3986_v44 }
 0x823   : > { %v2862_v45 = vpop.xlane.xlu1 %2861 }
 0x824   : > { %v2865_v50 = vmul.f32 0.0078125, %v2862_v45 }
 0x826   : > { %v2867_v51 = vsub.f32 %v5073_v42, %v2865_v50 }
 0x827   : > { %v2864_v52 = vpop.xlane.xlu0 %2863 }
 0x828   : > { %v2866_v53 = vmul.f32 0.0078125, %v2864_v52  ;;  %v2869_v54 = vmul.f32 %v2867_v51, %v2867_v51 }
 0x82a   : > { %v2868_v55 = vsub.f32 %v5077_v48, %v2866_v53  ;;  %2871 = vadd.xlane.f32.xlu0 %v2869_v54 }
 0x82c   : > { %v2870_v56 = vmul.f32 %v2868_v55, %v2868_v55 }
 0x82e   : > { %2873 = vadd.xlane.f32.xlu0 %v2870_v56 }
 0x8b3   : > { %v2872_v26 = vpop.xlane.xlu0 %2871 }
 0x8b4   : > { %v2875_v7 = vmul.f32 0.0078125, %v2872_v26 }
 0x8b6   : > { %v2877_v25 = vadd.f32 1e-05, %v2875_v7 }
 0x8b7   : > { %v2874_v13 = vpop.xlane.xlu0 %2873 }
 0x8b8   : > { %4027 = vrsqrt.f32 %v2877_v25  ;;  %v2876_v14 = vmul.f32 0.0078125, %v2874_v13 }
 0x8ba   : > { %v2878_v19 = vadd.f32 1e-05, %v2876_v14 }
 0x8bc   : > { %4029 = vrsqrt.f32 %v2878_v19 }
 0x8c5   : > { %v4028_v63 = vpop.eup %4027 }
 0x8c6   : > { %v2881_v20 = vmul.f32 %v4028_v63, %v2867_v51 }
 0x8c8   : > { %v2889_v11 = vmul.f32 %v3509_v9, %v2881_v20  ;;  %v3527_v20 = vld [vmem:[%s5217_s19] ss:$0 sm:$0xff] }
 0x8c9   : > { %v4030_v10 = vpop.eup %4029 }
 0x8ca   : > { %v2882_v3 = vmul.f32 %v4030_v10, %v2868_v55  ;;  %v2897_v21 = vadd.f32 %v3510_v47, %v2889_v11 }
 0x8cc   : > { %v2890_v12 = vmul.f32 %v3509_v9, %v2882_v3 }
 0x8ce   : > { %v2898_v22 = vadd.f32 %v3510_v47, %v2890_v12 }
 0x8d0   : > { %v2899_v23 = vpack.c.bf16 %v2898_v22, %v2897_v21 }
 0x8d2   : > { %3041 = vmatmul.mubr.bf16.vlgmr.msra.gmra.mxu1 %v2899_v23 }
 0x992   : > { %v3042_v45 = vpop.f32.mrf.mxu1 }
 0x993   : > { %v3043_v50 = vadd.f32 %v3042_v45, %v2921_v49 }
 0x994   : > { %v3044_v51 = vpop.f32.mrf.mxu1 }
 0x995   : > { %v3045_v52 = vadd.f32 %v3044_v51, %v2925_v43  ;;  %v3056_v53 = vmul.f32 0.70710677, %v3043_v50  ;;  %v3051_v40 = vmul.f32 0.5, %v3043_v50 }
 0x996   : > { %v3046_v54 = vpop.f32.mrf.mxu1 }
 0x997   : > { %v3057_v55 = vmul.f32 0.70710677, %v3045_v52  ;;  %v3047_v56 = vadd.f32 %v3046_v54, %v2921_v49  ;;  %v3052_v5 = vmul.f32 0.5, %v3045_v52 }
 0x998   : > { %v3048_v57 = vpop.f32.mrf.mxu1 }
 0x999   : > { %4031 = verf.f32 %v3057_v55  ;;  %v3058_v58 = vmul.f32 0.70710677, %v3047_v56  ;;  %v3049_v59 = vadd.f32 %v3048_v57, %v2925_v43  ;;  %v3053_v4 = vmul.f32 0.5, %v3047_v56 }
 0x99a   : > { %4033 = verf.f32 %v3056_v53 }
 0x99b   : > { %4035 = verf.f32 %v3058_v58  ;;  %v3059_v60 = vmul.f32 0.70710677, %v3049_v59  ;;  %v3054_v6 = vmul.f32 0.5, %v3049_v59 }
 0x99d   : > { %4037 = verf.f32 %v3059_v60 }
 0x9a6   : > { %v4032_v61 = vpop.eup %4031 }
 0x9a7   : > { %v4034_v36 = vpop.eup %4033  ;;  %v3065_v1 = vadd.f32 1.0, %v4032_v61 }
 0x9a8   : > { %v4036_v62 = vpop.eup %4035  ;;  %v3064_v0 = vadd.f32 1.0, %v4034_v36 }
 0x9a9   : > { %v3066_v28 = vadd.f32 1.0, %v4036_v62  ;;  %v3069_v7 = vmul.f32 %v3065_v1, %v3052_v5 }
 0x9aa   : > { %v4038_v2 = vpop.eup %4037  ;;  %v3068_v13 = vmul.f32 %v3064_v0, %v3051_v40 }
 0x9ab   : > { %v3067_v8 = vadd.f32 1.0, %v4038_v2  ;;  %v3070_v26 = vmul.f32 %v3066_v28, %v3053_v4 }
 0x9ad   : > { %v3071_v25 = vmul.f32 %v3067_v8, %v3054_v6  ;;  %v3072_v19 = vpack.c.bf16 %v3070_v26, %v3068_v13 }
 0x9af   : > { %v3073_v14 = vpack.c.bf16 %v3071_v25, %v3069_v7 }
 0x9b1   : > { %3241 = vmatprep.mubr.bf16.mxu0 %v3073_v14 }
 0x9b2   : > { %3242 = vmatmul.mubr.bf16.vlgmr.msra.gmra.mxu0 %v3072_v19 }
 0xa72   : > { %v3619_v63 = vpop.f32.mrf.mxu0 }
 0xa74   : > { %v3620_v9 = vpop.f32.mrf.mxu0 }
 0xa75   : > { %v3621_v10 = vadd.f32 %v3620_v9, %v3619_v63 }
 0xa76   : > { %v3622_v3 = vpop.f32.mrf.mxu0 }
 0xa77   : > { %v3244_v11 = vadd.f32 %v3621_v10, %v3527_v20 }
 0xa78   : > { %v3623_v47 = vpop.f32.mrf.mxu0 }
 0xa79   : > { %v3250_v12 = vadd.f32 %v3244_v11, %v5073_v42  ;;  %v3624_v21 = vadd.f32 %v3623_v47, %v3622_v3 }
 0xa7b   : > { %3252 = vst [vmem:[%s680_s17] sm:$0xff] %v3250_v12  ;;  %v3247_v22 = vadd.f32 %v3624_v21, %v3527_v20 }
 0xa7d   : > { %v3251_v23 = vadd.f32 %v3247_v22, %v5077_v48 }
 0xa7f   : > { %3253 = vst [vmem:[%s680_s17 + $0x8] sm:$0xff] %v3251_v23 }
 0xa80   : > { %4264 = shalt.err (!%p4261_p7)
}
 0xa81   : > { %s4265_s16 = scalar_lea.hbm %s5105_s13, 256  ;;  %s4269_s19 = scalar_lea.hbm %s5219_s0, 512 }
 0xa82   : > { %p4266_p12 = scmp.ne.s32.totalorder %s5105_s13, %s4265_s16  ;;  %p4270_p5 = scmp.lt.s32.totalorder %s5105_s13, %s5219_s0 }
 0xa83   : > { %p4271_p8 = scmp.lt.s32.totalorder %s4269_s19, %s4265_s16 }
 0xa84   : > { %p4267_p0 = pnand %p4266_p12, %p5220_p3 }
 0xa85   : > { %p4272_p9 = por %p4271_p8, %p4270_p5 }
 0xa86   : > { %p4268_p13 = pneg %p4267_p0 }
 0xa88   : > { %p4273_p1 = pnand %p4272_p9, %p4268_p13 }
 0xa8a   : > { %4276 = shalt.err (!%p4273_p1)
}
 0xa8b   : > { %s4370_s5 = smov 128   ;;  %s4371_s9 = smov 8  }
 0xa8c   : > { %3783 = dma.vmem_to_hbm [thread:$0]  (%p5220_p3), %s5100_s4, 256, %s5105_s13, %s3255_s15, %s4370_s5, %s4370_s5, %s4371_s9  }
 0xa8d PF: > { %s3285_s28 = sand.u32 1, %s4327_s24   ;;  %p5221_p4 = scmp.ne.s32.totalorder %s5209_s21, 0 }
 0xa8e   : > { %p5222_p2 = scmp.ge.s32.totalorder %s4347_s29, 2  ;;  %s3286_s30 = scalar_lea.sflag [#allocation4], %s3285_s28 }
 0xa90   : > { %p3812_p6 = pnand %p5222_p2, %p5221_p4 }
 0xa92   : > { %p3813_p11 = pneg %p3812_p6 }
 0xa94   : > { %4322 = dma.done.wait (%p3813_p11), %s3286_s30, 256  }
 0xa95   : > { %4324 = vsyncadd (%p3813_p11), %s3286_s30, 4294967040  ;;  %s37_s29 = sadd.s32 1, %s4347_s29   ;;  %s5223_s27 = sld [smem:[#allocation24_spill]] }
 0xa96   : > { %p34_p10 = scmp.ge.s32.totalorder %s37_s29, 4   ;;  %s5224_s28 = sld [smem:[#allocation25_spill]] }
 0xa97   : > { %s5225_s24 = smov %s4331_s25  ;;  %s5226_s25 = smov %s4335_s26 }
 0xa98   : > { %s5227_s26 = smov %s4624_s22  ;;  %36 = sbr.rel (!%p34_p10) target bundleno = 23 (0x17), region = 162 }
 0xa9d   :  { %3291 = vsyncpa [#allocation3], 1 }
 0xa9e   :  { %3293 = vsyncpa [#allocation3 + $0x1], 1 }
 0xa9f   :  { %3294 = vsyncpa [#allocation6], 1 }
 0xaa0   :  { %3295 = vsyncpa [#allocation9], 1 }
 0xaa1   :  { %3296 = vsyncpa [#allocation12], 1 }
 0xaa2   :  { %3297 = vsyncpa [#allocation15], 1 }
 0xaa3   :  { %3298 = vsyncpa [#allocation4], 1 }
 0xaa4   :  { %3300 = vsyncpa [#allocation4 + $0x1], 1 }

</bundles_post_ra>
